<compile_context>
chip_gen: v7x
topology: tpu7x:2x2x1
jax: 0.10.0
libtpu: 0.0.40
codegen_flags: <defaults>
</compile_context>

<pallas_src>
import math
import functools

import jax
import jax.numpy as jnp
from jax.experimental import pallas as pl
from jax.experimental.pallas import tpu as pltpu


# ---------------------------------------------------------------------------
# In-kernel helpers (operate on values + refs, called from the fused kernel)
# ---------------------------------------------------------------------------

def _layer_norm_f32(x, g, b):
    mean = jnp.mean(x, axis=-1, keepdims=True)
    var = jnp.mean((x - mean) ** 2, axis=-1, keepdims=True)
    return (x - mean) * jax.lax.rsqrt(var + 1e-6) * g + b


def _mha_sublayer(x_q, x_kv, mask, npad, ctx_ref,
                  wq_ref, bq_ref, wkv_ref, bkv_ref, wo_ref, bo_ref,
                  g_ref, b_ref, n_head, d_k, d_v):
    """Post-LN MHA sub-layer, entirely in VMEM.

    Full-width Q / fused-KV projections (1/sqrt(d_k) folded into wq at init),
    per-head attention on f32-activation slices, heads staged into `ctx_ref`,
    single full-K output projection, residual + LayerNorm + non-pad mask.
    """
    x_q16 = x_q.astype(jnp.bfloat16)
    x_kv16 = x_kv.astype(jnp.bfloat16)

    # Single full-width projections (MXU-friendly N = H*d_k / H*(d_k+d_v)).
    q = jnp.dot(x_q16, wq_ref[...], preferred_element_type=jnp.float32) \
        + bq_ref[...]                                    # (Lq, H*dk), pre-scaled
    kv = jnp.dot(x_kv16, wkv_ref[...], preferred_element_type=jnp.float32) \
        + bkv_ref[...]                                   # (Lk, H*(dk+dv))

    q16 = q.astype(jnp.bfloat16)
    k16 = kv[:, :n_head * d_k].astype(jnp.bfloat16)
    v16 = kv[:, n_head * d_k:].astype(jnp.bfloat16)

    # Heads: statically unrolled; slices are on activations, not weight refs.
    for h in range(n_head):
        q_h = q16[:, h * d_k:(h + 1) * d_k]              # (Lq, dk)
        k_h = k16[:, h * d_k:(h + 1) * d_k]              # (Lk, dk)
        v_h = v16[:, h * d_v:(h + 1) * d_v]              # (Lk, dv)

        s = jax.lax.dot_general(q_h, k_h, (((1,), (1,)), ((), ())),
                                preferred_element_type=jnp.float32)   # (Lq, Lk)
        s = jnp.where(mask, -1e30, s)                    # finite -> no NaN rows
        m = jnp.max(s, axis=-1, keepdims=True)
        p = jnp.exp(s - m)
        denom = jnp.sum(p, axis=-1, keepdims=True)
        p = p * pl.reciprocal(denom, approx=True)

        ctx_ref[:, h * d_v:(h + 1) * d_v] = jnp.dot(
            p.astype(jnp.bfloat16), v_h, preferred_element_type=jnp.float32)

    # Single output projection with full contraction K = H*d_v.
    out = jnp.dot(ctx_ref[...].astype(jnp.bfloat16), wo_ref[...],
                  preferred_element_type=jnp.float32) + bo_ref[...]
    out = out + x_q                                      # residual
    out = _layer_norm_f32(out, g_ref[...], b_ref[...])
    return out * npad                                    # keep last: zeroes pad rows


def _ffn_sublayer(x, npad, w1_ref, b1_ref, w2_ref, b2_ref, g_ref, b_ref):
    h = jnp.dot(x.astype(jnp.bfloat16), w1_ref[...],
                preferred_element_type=jnp.float32) + b1_ref[...]
    h = jnp.maximum(h, 0.0)
    out = jnp.dot(h.astype(jnp.bfloat16), w2_ref[...],
                  preferred_element_type=jnp.float32) + b2_ref[...]
    out = out + x                                        # residual
    out = _layer_norm_f32(out, g_ref[...], b_ref[...])
    return out * npad


# ---------------------------------------------------------------------------
# Fused whole-decoder-stack kernel
# ---------------------------------------------------------------------------

def _decoder_stack_kernel(
        # activations / masks (per batch element)
        dec_emb_ref, enc_ref, kpad_self_ref, kpad_enc_ref, npad_ref,
        # encoder-output LayerNorm params
        encln_g_ref, encln_b_ref,
        # self-attention weights (per layer)
        s_wq, s_bq, s_wkv, s_bkv, s_wo, s_bo, s_g, s_b,
        # enc-dec attention weights (per layer)
        e_wq, e_bq, e_wkv, e_bkv, e_wo, e_bo, e_g, e_b,
        # FFN weights (per layer)
        f_w1, f_b1, f_w2, f_b2, f_g, f_b,
        # output
        o_ref,
        # scratch
        dec_state, enc_ln, ctx_scratch,
        *, n_head, d_k, d_v):
    l = pl.program_id(1)

    @pl.when(l == 0)
    def _():
        # Stage the layer-0 input and LayerNorm(enc_output) once per batch
        # element; both stay resident in VMEM for every layer step.
        dec_state[...] = dec_emb_ref[...]
        enc_ln[...] = _layer_norm_f32(enc_ref[...], encln_g_ref[...],
                                      encln_b_ref[...])

    Lq = dec_state.shape[0]
    Lk = enc_ln.shape[0]
    npad = npad_ref[...]                                     # (Lq, 1)

    # Attention masks built on the VPU (no (B, Lq, Lk) tensors in HBM).
    mask_self = jnp.broadcast_to(kpad_self_ref[...] > 0.5, (Lq, Lq))
    row = jax.lax.broadcasted_iota(jnp.int32, (Lq, Lq), 0)
    col = jax.lax.broadcasted_iota(jnp.int32, (Lq, Lq), 1)
    mask_self = jnp.logical_or(mask_self, col > row)         # causal + key pad
    mask_enc = jnp.broadcast_to(kpad_enc_ref[...] > 0.5, (Lq, Lk))

    x = dec_state[...]
    enc = enc_ln[...]

    # masked self-attention (q and kv are the same VMEM-resident state)
    x = _mha_sublayer(x, x, mask_self, npad, ctx_scratch,
                      s_wq, s_bq, s_wkv, s_bkv, s_wo, s_bo, s_g, s_b,
                      n_head, d_k, d_v)
    # encoder-decoder attention
    x = _mha_sublayer(x, enc, mask_enc, npad, ctx_scratch,
                      e_wq, e_bq, e_wkv, e_bkv, e_wo, e_bo, e_g, e_b,
                      n_head, d_k, d_v)
    # position-wise FFN
    x = _ffn_sublayer(x, npad, f_w1, f_b1, f_w2, f_b2, f_g, f_b)

    dec_state[...] = x

    @pl.when(l == pl.num_programs(1) - 1)
    def _():
        o_ref[...] = x


def decoder_forward(params, x_tokens, y_tokens, pos, enc_output, cfg):
    pad = cfg["pad"]
    D = cfg["model_size"]
    H, dk, dv = cfg["n_head"], cfg["d_k"], cfg["d_v"]
    n_layer = cfg["n_layer"]
    dff = cfg["d_inner"]

    B, Ly = y_tokens.shape
    Lx = x_tokens.shape[1]

    # pad / non-pad row vectors (mask matrices are built inside the kernel)
    non_pad = (y_tokens != pad).astype(jnp.float32)[:, :, None]    # (B, Ly, 1)
    kpad_self = (y_tokens == pad).astype(jnp.float32)[:, None, :]  # (B, 1, Ly)
    kpad_enc = (x_tokens == pad).astype(jnp.float32)[:, None, :]   # (B, 1, Lx)

    # embedding * sqrt(d_model) + positional encoding (gathers stay in XLA)
    dec_emb = params["embedding"][y_tokens] * math.sqrt(D) + params["pos_enc"][pos]
    # dropout -> identity (eval mode)

    slf, enc, ffn = params["slf"], params["enc"], params["ffn"]

    kernel = functools.partial(_decoder_stack_kernel, n_head=H, d_k=dk, d_v=dv)

    def act(L_, D_):
        return pl.BlockSpec((None, L_, D_), lambda b, l: (b, 0, 0))

    def wsp(d0, d1):
        # per-layer stacked weights: leading axis indexed by the layer grid axis
        return pl.BlockSpec((None, d0, d1), lambda b, l: (l, 0, 0))

    vec = pl.BlockSpec((1, D), lambda b, l: (0, 0))
    d_qkv = H * (dk + dv)

    in_specs = [
        act(Ly, D), act(Lx, D),
        pl.BlockSpec((None, 1, Ly), lambda b, l: (b, 0, 0)),
        pl.BlockSpec((None, 1, Lx), lambda b, l: (b, 0, 0)),
        pl.BlockSpec((None, Ly, 1), lambda b, l: (b, 0, 0)),
        vec, vec,
        # self-attn
        wsp(D, H * dk), wsp(1, H * dk), wsp(D, d_qkv), wsp(1, d_qkv),
        wsp(H * dv, D), wsp(1, D), wsp(1, D), wsp(1, D),
        # enc-dec attn
        wsp(D, H * dk), wsp(1, H * dk), wsp(D, d_qkv), wsp(1, d_qkv),
        wsp(H * dv, D), wsp(1, D), wsp(1, D), wsp(1, D),
        # FFN
        wsp(D, dff), wsp(1, dff), wsp(dff, D), wsp(1, D), wsp(1, D), wsp(1, D),
    ]

    flops_layer = (
        2 * Ly * D * (H * dk) + 2 * Ly * D * d_qkv
        + 2 * H * Ly * Ly * (dk + dv) + 2 * Ly * (H * dv) * D   # self-attn
        + 2 * Ly * D * (H * dk) + 2 * Lx * D * d_qkv
        + 2 * H * Ly * Lx * (dk + dv) + 2 * Ly * (H * dv) * D   # enc-dec attn
        + 4 * Ly * D * dff                                      # FFN
    )
    w_bytes_layer = 2 * (D * H * dk + D * d_qkv + H * dv * D + D * dff + dff * D)
    cost = pl.CostEstimate(
        flops=B * n_layer * flops_layer,
        transcendentals=B * n_layer * H * (Ly * Ly + Ly * Lx) + B * Lx,
        bytes_accessed=B * n_layer * w_bytes_layer + 4 * B * (3 * Ly * D + Lx * D))

    return pl.pallas_call(
        kernel,
        out_shape=jax.ShapeDtypeStruct((B, Ly, D), jnp.float32),
        grid=(B, n_layer),
        in_specs=in_specs,
        out_specs=pl.BlockSpec((None, Ly, D), lambda b, l: (b, 0, 0)),
        scratch_shapes=[
            pltpu.VMEM((Ly, D), jnp.float32),        # decoder state across layers
            pltpu.VMEM((Lx, D), jnp.float32),        # LayerNorm(enc_output)
            pltpu.VMEM((Ly, H * dv), jnp.float32),   # staged attention heads
        ],
        compiler_params=pltpu.CompilerParams(
            dimension_semantics=("parallel", "arbitrary")),
        cost_estimate=cost,
    )(dec_emb, enc_output, kpad_self, kpad_enc, non_pad,
      params["enc_ln_g"], params["enc_ln_b"],
      slf["wq"], slf["bq"], slf["wkv"], slf["bkv"], slf["wo"], slf["bo"],
      slf["g"], slf["b"],
      enc["wq"], enc["bq"], enc["wkv"], enc["bkv"], enc["wo"], enc["bo"],
      enc["g"], enc["b"],
      ffn["w1"], ffn["b1"], ffn["w2"], ffn["b2"], ffn["g"], ffn["b"])


# ---------------------------------------------------------------------------
# Deterministic parameter construction (weights bf16, bias/LN f32, layer-stacked)
# ---------------------------------------------------------------------------

def positional_encoding(length, model_size):
    # TODO(synk): assumes even model_size (like the torch reference)
    pe = jnp.zeros((length, model_size), jnp.float32)
    position = jnp.arange(0.0, length)[:, None]
    div_term = jnp.exp(
        jnp.arange(0.0, model_size, 2) * (-math.log(10000.0) / model_size))
    pe = pe.at[:, 0::2].set(jnp.sin(position * div_term))
    pe = pe.at[:, 1::2].set(jnp.cos(position * div_term))
    return pe


def init_linear(key, din, dout):
    k1, k2 = jax.random.split(key)
    w = jax.random.normal(k1, (din, dout), jnp.float32) / math.sqrt(din)
    b = jax.random.normal(k2, (dout,), jnp.float32) * 0.01
    return w, b


def init_mha_layer(key, D, n_head, d_k, d_v):
    ks = jax.random.split(key, 4)
    wq, bq = init_linear(ks[0], D, n_head * d_k)
    wk, bk = init_linear(ks[1], D, n_head * d_k)
    wv, bv = init_linear(ks[2], D, n_head * d_v)
    wo, bo = init_linear(ks[3], n_head * d_v, D)
    scale = 1.0 / math.sqrt(d_k)
    # Fold the 1/sqrt(d_k) attention temperature into the Q projection so the
    # kernel never multiplies the (Lq, Lk) score tiles on the VPU.
    wq = wq * scale
    bq = bq * scale
    return dict(
        wq=wq.astype(jnp.bfloat16), bq=bq.reshape(1, n_head * d_k),
        wkv=jnp.concatenate([wk, wv], axis=1).astype(jnp.bfloat16),
        bkv=jnp.concatenate([bk, bv]).reshape(1, n_head * (d_k + d_v)),
        wo=wo.astype(jnp.bfloat16), bo=bo.reshape(1, D),
        g=jnp.ones((1, D), jnp.float32), b=jnp.zeros((1, D), jnp.float32),
    )


def init_ffn_layer(key, D, dff):
    k1, k2 = jax.random.split(key)
    w1, b1 = init_linear(k1, D, dff)
    w2, b2 = init_linear(k2, dff, D)
    return dict(w1=w1.astype(jnp.bfloat16), b1=b1.reshape(1, dff),
                w2=w2.astype(jnp.bfloat16), b2=b2.reshape(1, D),
                g=jnp.ones((1, D), jnp.float32), b=jnp.zeros((1, D), jnp.float32))


def _stack(layer_dicts):
    return {k: jnp.stack([d[k] for d in layer_dicts], axis=0)
            for k in layer_dicts[0]}


def init_params(key, cfg):
    D = cfg["model_size"]
    dff = cfg["d_inner"]
    H, dk, dv = cfg["n_head"], cfg["d_k"], cfg["d_v"]
    ks = jax.random.split(key, 1 + cfg["n_layer"])
    slf_layers, enc_layers, ffn_layers = [], [], []
    for li in range(cfg["n_layer"]):
        lk = jax.random.split(ks[1 + li], 3)
        slf_layers.append(init_mha_layer(lk[0], D, H, dk, dv))
        enc_layers.append(init_mha_layer(lk[1], D, H, dk, dv))
        ffn_layers.append(init_ffn_layer(lk[2], D, dff))
    return {
        "embedding": jax.random.normal(ks[0], (cfg["tgt_vocab_size"], D),
                                       jnp.float32) * 0.1,
        "pos_enc": positional_encoding(cfg["s_len"] + 1, D),
        "enc_ln_g": jnp.ones((1, D), jnp.float32),
        "enc_ln_b": jnp.zeros((1, D), jnp.float32),
        "slf": _stack(slf_layers),
        "enc": _stack(enc_layers),
        "ffn": _stack(ffn_layers),
    }


# ---------------------------------------------------------------------------
# Main
# ---------------------------------------------------------------------------

if __name__ == "__main__":
    cfg = dict(
        pad=0,
        model_size=32,
        tgt_vocab_size=50,
        s_len=8,
        n_layer=2,
        n_head=4,
        d_k=8,
        d_v=8,
        d_inner=64,
        dropout=0.1,   # eval mode -> identity
    )

    key = jax.random.PRNGKey(0)
    kp, kx, ky, ke = jax.random.split(key, 4)

    params = init_params(kp, cfg)

    B, S = 2, cfg["s_len"]
    x = jax.random.randint(kx, (B, S), 1, cfg["tgt_vocab_size"], jnp.int32)
    y = jax.random.randint(ky, (B, S), 1, cfg["tgt_vocab_size"], jnp.int32)
    # exercise the pad-mask path (finite -1e30 masking keeps everything finite)
    y = y.at[1, -1].set(cfg["pad"])
    pos = jnp.broadcast_to(jnp.arange(1, S + 1, dtype=jnp.int32), (B, S))
    pos = jnp.where(y != cfg["pad"], pos, 0)
    enc_output = jax.random.normal(ke, (B, S, cfg["model_size"]), jnp.float32)

    fwd = jax.jit(lambda p_, x_, y_, pos_, e_:
                  decoder_forward(p_, x_, y_, pos_, e_, cfg))
    out = jax.block_until_ready(fwd(params, x, y, pos, enc_output))

    assert out.shape == (B, S, cfg["model_size"])
    assert bool(jnp.all(jnp.isfinite(out)))
    print("KERNEL_OK")
</pallas_src>

<mosaic_0001>
module attributes {stable_mosaic.version = 11 : i64} {
  func.func @_decoder_stack_kernel(%arg0: i32, %arg1: i32, %arg2: memref<1x8x32xf32, #tpu.memory_space<vmem>>, %arg3: memref<1x8x32xf32, #tpu.memory_space<vmem>>, %arg4: memref<1x1x8xf32, #tpu.memory_space<vmem>>, %arg5: memref<1x1x8xf32, #tpu.memory_space<vmem>>, %arg6: memref<1x8x1xf32, #tpu.memory_space<vmem>>, %arg7: memref<1x32xf32, #tpu.memory_space<vmem>>, %arg8: memref<1x32xf32, #tpu.memory_space<vmem>>, %arg9: memref<1x32x32xbf16, #tpu.memory_space<vmem>>, %arg10: memref<1x1x32xf32, #tpu.memory_space<vmem>>, %arg11: memref<1x32x64xbf16, #tpu.memory_space<vmem>>, %arg12: memref<1x1x64xf32, #tpu.memory_space<vmem>>, %arg13: memref<1x32x32xbf16, #tpu.memory_space<vmem>>, %arg14: memref<1x1x32xf32, #tpu.memory_space<vmem>>, %arg15: memref<1x1x32xf32, #tpu.memory_space<vmem>>, %arg16: memref<1x1x32xf32, #tpu.memory_space<vmem>>, %arg17: memref<1x32x32xbf16, #tpu.memory_space<vmem>>, %arg18: memref<1x1x32xf32, #tpu.memory_space<vmem>>, %arg19: memref<1x32x64xbf16, #tpu.memory_space<vmem>>, %arg20: memref<1x1x64xf32, #tpu.memory_space<vmem>>, %arg21: memref<1x32x32xbf16, #tpu.memory_space<vmem>>, %arg22: memref<1x1x32xf32, #tpu.memory_space<vmem>>, %arg23: memref<1x1x32xf32, #tpu.memory_space<vmem>>, %arg24: memref<1x1x32xf32, #tpu.memory_space<vmem>>, %arg25: memref<1x32x64xbf16, #tpu.memory_space<vmem>>, %arg26: memref<1x1x64xf32, #tpu.memory_space<vmem>>, %arg27: memref<1x64x32xbf16, #tpu.memory_space<vmem>>, %arg28: memref<1x1x32xf32, #tpu.memory_space<vmem>>, %arg29: memref<1x1x32xf32, #tpu.memory_space<vmem>>, %arg30: memref<1x1x32xf32, #tpu.memory_space<vmem>>, %arg31: memref<1x8x32xf32, #tpu.memory_space<vmem>>, %arg32: memref<8x32xf32, #tpu.memory_space<vmem>>, %arg33: memref<8x32xf32, #tpu.memory_space<vmem>>, %arg34: memref<8x32xf32, #tpu.memory_space<vmem>>) attributes {dimension_semantics = [#tpu.dimension_semantics<parallel>, #tpu.dimension_semantics<arbitrary>], iteration_bounds = array<i64: 2, 2>, scalar_prefetch = 0 : i64, scratch_operands = 3 : i64, tpu.core_type = #tpu.core_type<tc>, window_params = [{transform_indices = @transform_0, window_bounds = array<i64: 1, 8, 32>}, {transform_indices = @transform_1, window_bounds = array<i64: 1, 8, 32>}, {transform_indices = @transform_2, window_bounds = array<i64: 1, 1, 8>}, {transform_indices = @transform_3, window_bounds = array<i64: 1, 1, 8>}, {transform_indices = @transform_4, window_bounds = array<i64: 1, 8, 1>}, {pipeline_mode = #tpu.pipeline_mode<synchronous>, transform_indices = @transform_5, window_bounds = array<i64: 1, 32>}, {pipeline_mode = #tpu.pipeline_mode<synchronous>, transform_indices = @transform_6, window_bounds = array<i64: 1, 32>}, {transform_indices = @transform_7, window_bounds = array<i64: 1, 32, 32>}, {transform_indices = @transform_8, window_bounds = array<i64: 1, 1, 32>}, {transform_indices = @transform_9, window_bounds = array<i64: 1, 32, 64>}, {transform_indices = @transform_10, window_bounds = array<i64: 1, 1, 64>}, {transform_indices = @transform_11, window_bounds = array<i64: 1, 32, 32>}, {transform_indices = @transform_12, window_bounds = array<i64: 1, 1, 32>}, {transform_indices = @transform_13, window_bounds = array<i64: 1, 1, 32>}, {transform_indices = @transform_14, window_bounds = array<i64: 1, 1, 32>}, {transform_indices = @transform_15, window_bounds = array<i64: 1, 32, 32>}, {transform_indices = @transform_16, window_bounds = array<i64: 1, 1, 32>}, {transform_indices = @transform_17, window_bounds = array<i64: 1, 32, 64>}, {transform_indices = @transform_18, window_bounds = array<i64: 1, 1, 64>}, {transform_indices = @transform_19, window_bounds = array<i64: 1, 32, 32>}, {transform_indices = @transform_20, window_bounds = array<i64: 1, 1, 32>}, {transform_indices = @transform_21, window_bounds = array<i64: 1, 1, 32>}, {transform_indices = @transform_22, window_bounds = array<i64: 1, 1, 32>}, {transform_indices = @transform_23, window_bounds = array<i64: 1, 32, 64>}, {transform_indices = @transform_24, window_bounds = array<i64: 1, 1, 64>}, {transform_indices = @transform_25, window_bounds = array<i64: 1, 64, 32>}, {transform_indices = @transform_26, window_bounds = array<i64: 1, 1, 32>}, {transform_indices = @transform_27, window_bounds = array<i64: 1, 1, 32>}, {transform_indices = @transform_28, window_bounds = array<i64: 1, 1, 32>}, {transform_indices = @transform_29, window_bounds = array<i64: 1, 8, 32>}]} {
    %c0_i32 = arith.constant 0 : i32
    %0 = arith.cmpi eq, %arg1, %c0_i32 : i32
    %1 = arith.extui %0 : i1 to i32
    %c0_i32_0 = arith.constant 0 : i32
    %2 = arith.cmpi ne, %1, %c0_i32_0 : i32
    scf.if %2 {
      %c0_164 = arith.constant 0 : index
      %c0_165 = arith.constant 0 : index
      %c0_166 = arith.constant 0 : index
      %344 = vector.load %arg2[%c0_164, %c0_165, %c0_166] : memref<1x8x32xf32, #tpu.memory_space<vmem>>, vector<1x8x32xf32>
      %345 = vector.shape_cast %344 : vector<1x8x32xf32> to vector<8x32xf32>
      %c0_167 = arith.constant 0 : index
      %c0_168 = arith.constant 0 : index
      %346 = vector.load %arg32[%c0_167, %c0_168] : memref<8x32xf32, #tpu.memory_space<vmem>>, vector<8x32xf32>
      tpu.vector_store %arg32[%c0_167, %c0_168], %345 {strides = array<i32>} : memref<8x32xf32, #tpu.memory_space<vmem>>, vector<8x32xf32>,
      %c0_169 = arith.constant 0 : index
      %c0_170 = arith.constant 0 : index
      %c0_171 = arith.constant 0 : index
      %347 = vector.load %arg3[%c0_169, %c0_170, %c0_171] : memref<1x8x32xf32, #tpu.memory_space<vmem>>, vector<1x8x32xf32>
      %348 = vector.shape_cast %347 : vector<1x8x32xf32> to vector<8x32xf32>
      %c0_172 = arith.constant 0 : index
      %c0_173 = arith.constant 0 : index
      %349 = vector.load %arg7[%c0_172, %c0_173] : memref<1x32xf32, #tpu.memory_space<vmem>>, vector<1x32xf32>
      %c0_174 = arith.constant 0 : index
      %c0_175 = arith.constant 0 : index
      %350 = vector.load %arg8[%c0_174, %c0_175] : memref<1x32xf32, #tpu.memory_space<vmem>>, vector<1x32xf32>
      %cst_176 = arith.constant dense<0.000000e+00> : vector<8xf32>
      %351 = vector.multi_reduction <add>, %348, %cst_176 [1] : vector<8x32xf32> to vector<8xf32>
      %352 = vector.shape_cast %351 : vector<8xf32> to vector<8x1xf32>
      %cst_177 = arith.constant 3.200000e+01 : f32
      %353 = vector.broadcast %cst_177 : f32 to vector<8x1xf32>
      %354 = arith.divf %352, %353 : vector<8x1xf32>
      %355 = vector.broadcast %354 : vector<8x1xf32> to vector<8x32xf32>
      %356 = arith.subf %348, %355 : vector<8x32xf32>
      %357 = arith.mulf %356, %356 : vector<8x32xf32>
      %cst_178 = arith.constant dense<0.000000e+00> : vector<8xf32>
      %358 = vector.multi_reduction <add>, %357, %cst_178 [1] : vector<8x32xf32> to vector<8xf32>
      %359 = vector.shape_cast %358 : vector<8xf32> to vector<8x1xf32>
      %cst_179 = arith.constant 3.200000e+01 : f32
      %360 = vector.broadcast %cst_179 : f32 to vector<8x1xf32>
      %361 = arith.divf %359, %360 : vector<8x1xf32>
      %362 = vector.broadcast %354 : vector<8x1xf32> to vector<8x32xf32>
      %363 = arith.subf %348, %362 : vector<8x32xf32>
      %cst_180 = arith.constant 9.99999997E-7 : f32
      %364 = vector.broadcast %cst_180 : f32 to vector<8x1xf32>
      %365 = arith.addf %361, %364 : vector<8x1xf32>
      %366 = math.rsqrt %365 : vector<8x1xf32>
      %367 = vector.broadcast %366 : vector<8x1xf32> to vector<8x32xf32>
      %368 = arith.mulf %363, %367 : vector<8x32xf32>
      %369 = vector.broadcast %349 : vector<1x32xf32> to vector<8x32xf32>
      %370 = arith.mulf %368, %369 : vector<8x32xf32>
      %371 = vector.broadcast %350 : vector<1x32xf32> to vector<8x32xf32>
      %372 = arith.addf %370, %371 : vector<8x32xf32>
      %c0_181 = arith.constant 0 : index
      %c0_182 = arith.constant 0 : index
      %373 = vector.load %arg33[%c0_181, %c0_182] : memref<8x32xf32, #tpu.memory_space<vmem>>, vector<8x32xf32>
      tpu.vector_store %arg33[%c0_181, %c0_182], %372 {strides = array<i32>} : memref<8x32xf32, #tpu.memory_space<vmem>>, vector<8x32xf32>,
    } else {
    }
    %c0 = arith.constant 0 : index
    %c0_1 = arith.constant 0 : index
    %c0_2 = arith.constant 0 : index
    %3 = vector.load %arg6[%c0, %c0_1, %c0_2] : memref<1x8x1xf32, #tpu.memory_space<vmem>>, vector<1x8x1xf32>
    %4 = vector.shape_cast %3 : vector<1x8x1xf32> to vector<8x1xf32>
    %c0_3 = arith.constant 0 : index
    %c0_4 = arith.constant 0 : index
    %c0_5 = arith.constant 0 : index
    %5 = vector.load %arg4[%c0_3, %c0_4, %c0_5] : memref<1x1x8xf32, #tpu.memory_space<vmem>>, vector<1x1x8xf32>
    %6 = vector.shape_cast %5 : vector<1x1x8xf32> to vector<1x8xf32>
    %cst = arith.constant 5.000000e-01 : f32
    %7 = vector.broadcast %cst : f32 to vector<1x8xf32>
    %8 = arith.cmpf ogt, %6, %7 : vector<1x8xf32>
    %9 = vector.shape_cast %8 : vector<1x8xi1> to vector<1x8xi1>
    %10 = vector.broadcast %9 : vector<1x8xi1> to vector<8x8xi1>
    %11 = tpu.iota {dimensions = array<i32: 0>} : vector<8x8xi32>
    %12 = tpu.iota {dimensions = array<i32: 1>} : vector<8x8xi32>
    %13 = arith.cmpi sgt, %12, %11 : vector<8x8xi32>
    %14 = arith.ori %10, %13 : vector<8x8xi1>
    %c0_6 = arith.constant 0 : index
    %c0_7 = arith.constant 0 : index
    %c0_8 = arith.constant 0 : index
    %15 = vector.load %arg5[%c0_6, %c0_7, %c0_8] : memref<1x1x8xf32, #tpu.memory_space<vmem>>, vector<1x1x8xf32>
    %16 = vector.shape_cast %15 : vector<1x1x8xf32> to vector<1x8xf32>
    %cst_9 = arith.constant 5.000000e-01 : f32
    %17 = vector.broadcast %cst_9 : f32 to vector<1x8xf32>
    %18 = arith.cmpf ogt, %16, %17 : vector<1x8xf32>
    %19 = vector.shape_cast %18 : vector<1x8xi1> to vector<1x8xi1>
    %20 = vector.broadcast %19 : vector<1x8xi1> to vector<8x8xi1>
    %c0_10 = arith.constant 0 : index
    %c0_11 = arith.constant 0 : index
    %21 = vector.load %arg32[%c0_10, %c0_11] : memref<8x32xf32, #tpu.memory_space<vmem>>, vector<8x32xf32>
    %c0_12 = arith.constant 0 : index
    %c0_13 = arith.constant 0 : index
    %22 = vector.load %arg33[%c0_12, %c0_13] : memref<8x32xf32, #tpu.memory_space<vmem>>, vector<8x32xf32>
    %23 = arith.truncf %21 : vector<8x32xf32> to vector<8x32xbf16>
    %24 = arith.truncf %21 : vector<8x32xf32> to vector<8x32xbf16>
    %c0_14 = arith.constant 0 : index
    %c0_15 = arith.constant 0 : index
    %c0_16 = arith.constant 0 : index
    %25 = vector.load %arg9[%c0_14, %c0_15, %c0_16] : memref<1x32x32xbf16, #tpu.memory_space<vmem>>, vector<1x32x32xbf16>
    %26 = vector.shape_cast %25 : vector<1x32x32xbf16> to vector<32x32xbf16>
    %cst_17 = arith.constant dense<0.000000e+00> : vector<8x32xf32>
    %27 = tpu.matmul %23, %26, %cst_17 {dimension_numbers = #tpu.dot_dimension_numbers<[1], [0], [0], [1], [0, 0, 1, 1], [], []>} : vector<8x32xbf16>, vector<32x32xbf16>, vector<8x32xf32> -> vector<8x32xf32>
    %c0_18 = arith.constant 0 : index
    %c0_19 = arith.constant 0 : index
    %c0_20 = arith.constant 0 : index
    %28 = vector.load %arg10[%c0_18, %c0_19, %c0_20] : memref<1x1x32xf32, #tpu.memory_space<vmem>>, vector<1x1x32xf32>
    %29 = vector.shape_cast %28 : vector<1x1x32xf32> to vector<1x32xf32>
    %30 = vector.broadcast %29 : vector<1x32xf32> to vector<8x32xf32>
    %31 = arith.addf %27, %30 : vector<8x32xf32>
    %c0_21 = arith.constant 0 : index
    %c0_22 = arith.constant 0 : index
    %c0_23 = arith.constant 0 : index
    %32 = vector.load %arg11[%c0_21, %c0_22, %c0_23] : memref<1x32x64xbf16, #tpu.memory_space<vmem>>, vector<1x32x64xbf16>
    %33 = vector.shape_cast %32 : vector<1x32x64xbf16> to vector<32x64xbf16>
    %cst_24 = arith.constant dense<0.000000e+00> : vector<8x64xf32>
    %34 = tpu.matmul %24, %33, %cst_24 {dimension_numbers = #tpu.dot_dimension_numbers<[1], [0], [0], [1], [0, 0, 1, 1], [], []>} : vector<8x32xbf16>, vector<32x64xbf16>, vector<8x64xf32> -> vector<8x64xf32>
    %c0_25 = arith.constant 0 : index
    %c0_26 = arith.constant 0 : index
    %c0_27 = arith.constant 0 : index
    %35 = vector.load %arg12[%c0_25, %c0_26, %c0_27] : memref<1x1x64xf32, #tpu.memory_space<vmem>>, vector<1x1x64xf32>
    %36 = vector.shape_cast %35 : vector<1x1x64xf32> to vector<1x64xf32>
    %37 = vector.broadcast %36 : vector<1x64xf32> to vector<8x64xf32>
    %38 = arith.addf %34, %37 : vector<8x64xf32>
    %39 = arith.truncf %31 : vector<8x32xf32> to vector<8x32xbf16>
    %40 = vector.extract_strided_slice %38 {offsets = [0, 0], sizes = [8, 32], strides = [1, 1]} : vector<8x64xf32> to vector<8x32xf32>
    %41 = arith.truncf %40 : vector<8x32xf32> to vector<8x32xbf16>
    %42 = vector.extract_strided_slice %38 {offsets = [0, 32], sizes = [8, 32], strides = [1, 1]} : vector<8x64xf32> to vector<8x32xf32>
    %43 = arith.truncf %42 : vector<8x32xf32> to vector<8x32xbf16>
    %44 = vector.extract_strided_slice %39 {offsets = [0, 0], sizes = [8, 8], strides = [1, 1]} : vector<8x32xbf16> to vector<8x8xbf16>
    %45 = vector.extract_strided_slice %41 {offsets = [0, 0], sizes = [8, 8], strides = [1, 1]} : vector<8x32xbf16> to vector<8x8xbf16>
    %46 = vector.extract_strided_slice %43 {offsets = [0, 0], sizes = [8, 8], strides = [1, 1]} : vector<8x32xbf16> to vector<8x8xbf16>
    %cst_28 = arith.constant dense<0.000000e+00> : vector<8x8xf32>
    %47 = tpu.matmul %44, %45, %cst_28 {dimension_numbers = #tpu.dot_dimension_numbers<[1], [1], [0], [0], [0, 0, 1, 0], [], []>} : vector<8x8xbf16>, vector<8x8xbf16>, vector<8x8xf32> -> vector<8x8xf32>
    %cst_29 = arith.constant -1.000000e+30 : f32
    %48 = vector.broadcast %cst_29 : f32 to vector<8x8xf32>
    %49 = arith.select %14, %48, %47 : vector<8x8xi1>, vector<8x8xf32>
    %cst_30 = arith.constant dense<0xFF800000> : vector<8xf32>
    %50 = vector.multi_reduction <maximumf>, %49, %cst_30 [1] : vector<8x8xf32> to vector<8xf32>
    %51 = vector.shape_cast %50 : vector<8xf32> to vector<8x1xf32>
    %52 = vector.broadcast %51 : vector<8x1xf32> to vector<8x8xf32>
    %53 = arith.subf %49, %52 : vector<8x8xf32>
    %54 = math.exp %53 : vector<8x8xf32>
    %cst_31 = arith.constant dense<0.000000e+00> : vector<8xf32>
    %55 = vector.multi_reduction <add>, %54, %cst_31 [1] : vector<8x8xf32> to vector<8xf32>
    %56 = vector.shape_cast %55 : vector<8xf32> to vector<8x1xf32>
    %57 = tpu.reciprocal %56 {approx = true} : vector<8x1xf32> -> vector<8x1xf32>
    %58 = vector.broadcast %57 : vector<8x1xf32> to vector<8x8xf32>
    %59 = arith.mulf %54, %58 : vector<8x8xf32>
    %60 = arith.truncf %59 : vector<8x8xf32> to vector<8x8xbf16>
    %cst_32 = arith.constant dense<0.000000e+00> : vector<8x8xf32>
    %61 = tpu.matmul %60, %46, %cst_32 {dimension_numbers = #tpu.dot_dimension_numbers<[1], [0], [0], [1], [0, 0, 1, 1], [], []>} : vector<8x8xbf16>, vector<8x8xbf16>, vector<8x8xf32> -> vector<8x8xf32>
    %c0_33 = arith.constant 0 : index
    %c0_34 = arith.constant 0 : index
    %62 = vector.load %arg34[%c0_33, %c0_34] : memref<8x32xf32, #tpu.memory_space<vmem>>, vector<8x8xf32>
    tpu.vector_store %arg34[%c0_33, %c0_34], %61 {strides = array<i32>} : memref<8x32xf32, #tpu.memory_space<vmem>>, vector<8x8xf32>,
    %63 = vector.extract_strided_slice %39 {offsets = [0, 8], sizes = [8, 8], strides = [1, 1]} : vector<8x32xbf16> to vector<8x8xbf16>
    %64 = vector.extract_strided_slice %41 {offsets = [0, 8], sizes = [8, 8], strides = [1, 1]} : vector<8x32xbf16> to vector<8x8xbf16>
    %65 = vector.extract_strided_slice %43 {offsets = [0, 8], sizes = [8, 8], strides = [1, 1]} : vector<8x32xbf16> to vector<8x8xbf16>
    %cst_35 = arith.constant dense<0.000000e+00> : vector<8x8xf32>
    %66 = tpu.matmul %63, %64, %cst_35 {dimension_numbers = #tpu.dot_dimension_numbers<[1], [1], [0], [0], [0, 0, 1, 0], [], []>} : vector<8x8xbf16>, vector<8x8xbf16>, vector<8x8xf32> -> vector<8x8xf32>
    %cst_36 = arith.constant -1.000000e+30 : f32
    %67 = vector.broadcast %cst_36 : f32 to vector<8x8xf32>
    %68 = arith.select %14, %67, %66 : vector<8x8xi1>, vector<8x8xf32>
    %cst_37 = arith.constant dense<0xFF800000> : vector<8xf32>
    %69 = vector.multi_reduction <maximumf>, %68, %cst_37 [1] : vector<8x8xf32> to vector<8xf32>
    %70 = vector.shape_cast %69 : vector<8xf32> to vector<8x1xf32>
    %71 = vector.broadcast %70 : vector<8x1xf32> to vector<8x8xf32>
    %72 = arith.subf %68, %71 : vector<8x8xf32>
    %73 = math.exp %72 : vector<8x8xf32>
    %cst_38 = arith.constant dense<0.000000e+00> : vector<8xf32>
    %74 = vector.multi_reduction <add>, %73, %cst_38 [1] : vector<8x8xf32> to vector<8xf32>
    %75 = vector.shape_cast %74 : vector<8xf32> to vector<8x1xf32>
    %76 = tpu.reciprocal %75 {approx = true} : vector<8x1xf32> -> vector<8x1xf32>
    %77 = vector.broadcast %76 : vector<8x1xf32> to vector<8x8xf32>
    %78 = arith.mulf %73, %77 : vector<8x8xf32>
    %79 = arith.truncf %78 : vector<8x8xf32> to vector<8x8xbf16>
    %cst_39 = arith.constant dense<0.000000e+00> : vector<8x8xf32>
    %80 = tpu.matmul %79, %65, %cst_39 {dimension_numbers = #tpu.dot_dimension_numbers<[1], [0], [0], [1], [0, 0, 1, 1], [], []>} : vector<8x8xbf16>, vector<8x8xbf16>, vector<8x8xf32> -> vector<8x8xf32>
    %c0_40 = arith.constant 0 : index
    %c8 = arith.constant 8 : index
    %81 = vector.load %arg34[%c0_40, %c8] : memref<8x32xf32, #tpu.memory_space<vmem>>, vector<8x8xf32>
    tpu.vector_store %arg34[%c0_40, %c8], %80 {strides = array<i32>} : memref<8x32xf32, #tpu.memory_space<vmem>>, vector<8x8xf32>,
    %82 = vector.extract_strided_slice %39 {offsets = [0, 16], sizes = [8, 8], strides = [1, 1]} : vector<8x32xbf16> to vector<8x8xbf16>
    %83 = vector.extract_strided_slice %41 {offsets = [0, 16], sizes = [8, 8], strides = [1, 1]} : vector<8x32xbf16> to vector<8x8xbf16>
    %84 = vector.extract_strided_slice %43 {offsets = [0, 16], sizes = [8, 8], strides = [1, 1]} : vector<8x32xbf16> to vector<8x8xbf16>
    %cst_41 = arith.constant dense<0.000000e+00> : vector<8x8xf32>
    %85 = tpu.matmul %82, %83, %cst_41 {dimension_numbers = #tpu.dot_dimension_numbers<[1], [1], [0], [0], [0, 0, 1, 0], [], []>} : vector<8x8xbf16>, vector<8x8xbf16>, vector<8x8xf32> -> vector<8x8xf32>
    %cst_42 = arith.constant -1.000000e+30 : f32
    %86 = vector.broadcast %cst_42 : f32 to vector<8x8xf32>
    %87 = arith.select %14, %86, %85 : vector<8x8xi1>, vector<8x8xf32>
    %cst_43 = arith.constant dense<0xFF800000> : vector<8xf32>
    %88 = vector.multi_reduction <maximumf>, %87, %cst_43 [1] : vector<8x8xf32> to vector<8xf32>
    %89 = vector.shape_cast %88 : vector<8xf32> to vector<8x1xf32>
    %90 = vector.broadcast %89 : vector<8x1xf32> to vector<8x8xf32>
    %91 = arith.subf %87, %90 : vector<8x8xf32>
    %92 = math.exp %91 : vector<8x8xf32>
    %cst_44 = arith.constant dense<0.000000e+00> : vector<8xf32>
    %93 = vector.multi_reduction <add>, %92, %cst_44 [1] : vector<8x8xf32> to vector<8xf32>
    %94 = vector.shape_cast %93 : vector<8xf32> to vector<8x1xf32>
    %95 = tpu.reciprocal %94 {approx = true} : vector<8x1xf32> -> vector<8x1xf32>
    %96 = vector.broadcast %95 : vector<8x1xf32> to vector<8x8xf32>
    %97 = arith.mulf %92, %96 : vector<8x8xf32>
    %98 = arith.truncf %97 : vector<8x8xf32> to vector<8x8xbf16>
    %cst_45 = arith.constant dense<0.000000e+00> : vector<8x8xf32>
    %99 = tpu.matmul %98, %84, %cst_45 {dimension_numbers = #tpu.dot_dimension_numbers<[1], [0], [0], [1], [0, 0, 1, 1], [], []>} : vector<8x8xbf16>, vector<8x8xbf16>, vector<8x8xf32> -> vector<8x8xf32>
    %c0_46 = arith.constant 0 : index
    %c16 = arith.constant 16 : index
    %100 = vector.load %arg34[%c0_46, %c16] : memref<8x32xf32, #tpu.memory_space<vmem>>, vector<8x8xf32>
    tpu.vector_store %arg34[%c0_46, %c16], %99 {strides = array<i32>} : memref<8x32xf32, #tpu.memory_space<vmem>>, vector<8x8xf32>,
    %101 = vector.extract_strided_slice %39 {offsets = [0, 24], sizes = [8, 8], strides = [1, 1]} : vector<8x32xbf16> to vector<8x8xbf16>
    %102 = vector.extract_strided_slice %41 {offsets = [0, 24], sizes = [8, 8], strides = [1, 1]} : vector<8x32xbf16> to vector<8x8xbf16>
    %103 = vector.extract_strided_slice %43 {offsets = [0, 24], sizes = [8, 8], strides = [1, 1]} : vector<8x32xbf16> to vector<8x8xbf16>
    %cst_47 = arith.constant dense<0.000000e+00> : vector<8x8xf32>
    %104 = tpu.matmul %101, %102, %cst_47 {dimension_numbers = #tpu.dot_dimension_numbers<[1], [1], [0], [0], [0, 0, 1, 0], [], []>} : vector<8x8xbf16>, vector<8x8xbf16>, vector<8x8xf32> -> vector<8x8xf32>
    %cst_48 = arith.constant -1.000000e+30 : f32
    %105 = vector.broadcast %cst_48 : f32 to vector<8x8xf32>
    %106 = arith.select %14, %105, %104 : vector<8x8xi1>, vector<8x8xf32>
    %cst_49 = arith.constant dense<0xFF800000> : vector<8xf32>
    %107 = vector.multi_reduction <maximumf>, %106, %cst_49 [1] : vector<8x8xf32> to vector<8xf32>
    %108 = vector.shape_cast %107 : vector<8xf32> to vector<8x1xf32>
    %109 = vector.broadcast %108 : vector<8x1xf32> to vector<8x8xf32>
    %110 = arith.subf %106, %109 : vector<8x8xf32>
    %111 = math.exp %110 : vector<8x8xf32>
    %cst_50 = arith.constant dense<0.000000e+00> : vector<8xf32>
    %112 = vector.multi_reduction <add>, %111, %cst_50 [1] : vector<8x8xf32> to vector<8xf32>
    %113 = vector.shape_cast %112 : vector<8xf32> to vector<8x1xf32>
    %114 = tpu.reciprocal %113 {approx = true} : vector<8x1xf32> -> vector<8x1xf32>
    %115 = vector.broadcast %114 : vector<8x1xf32> to vector<8x8xf32>
    %116 = arith.mulf %111, %115 : vector<8x8xf32>
    %117 = arith.truncf %116 : vector<8x8xf32> to vector<8x8xbf16>
    %cst_51 = arith.constant dense<0.000000e+00> : vector<8x8xf32>
    %118 = tpu.matmul %117, %103, %cst_51 {dimension_numbers = #tpu.dot_dimension_numbers<[1], [0], [0], [1], [0, 0, 1, 1], [], []>} : vector<8x8xbf16>, vector<8x8xbf16>, vector<8x8xf32> -> vector<8x8xf32>
    %c0_52 = arith.constant 0 : index
    %c24 = arith.constant 24 : index
    %119 = vector.load %arg34[%c0_52, %c24] : memref<8x32xf32, #tpu.memory_space<vmem>>, vector<8x8xf32>
    tpu.vector_store %arg34[%c0_52, %c24], %118 {strides = array<i32>} : memref<8x32xf32, #tpu.memory_space<vmem>>, vector<8x8xf32>,
    %c0_53 = arith.constant 0 : index
    %c0_54 = arith.constant 0 : index
    %120 = vector.load %arg34[%c0_53, %c0_54] : memref<8x32xf32, #tpu.memory_space<vmem>>, vector<8x32xf32>
    %121 = arith.truncf %120 : vector<8x32xf32> to vector<8x32xbf16>
    %c0_55 = arith.constant 0 : index
    %c0_56 = arith.constant 0 : index
    %c0_57 = arith.constant 0 : index
    %122 = vector.load %arg13[%c0_55, %c0_56, %c0_57] : memref<1x32x32xbf16, #tpu.memory_space<vmem>>, vector<1x32x32xbf16>
    %123 = vector.shape_cast %122 : vector<1x32x32xbf16> to vector<32x32xbf16>
    %cst_58 = arith.constant dense<0.000000e+00> : vector<8x32xf32>
    %124 = tpu.matmul %121, %123, %cst_58 {dimension_numbers = #tpu.dot_dimension_numbers<[1], [0], [0], [1], [0, 0, 1, 1], [], []>} : vector<8x32xbf16>, vector<32x32xbf16>, vector<8x32xf32> -> vector<8x32xf32>
    %c0_59 = arith.constant 0 : index
    %c0_60 = arith.constant 0 : index
    %c0_61 = arith.constant 0 : index
    %125 = vector.load %arg14[%c0_59, %c0_60, %c0_61] : memref<1x1x32xf32, #tpu.memory_space<vmem>>, vector<1x1x32xf32>
    %126 = vector.shape_cast %125 : vector<1x1x32xf32> to vector<1x32xf32>
    %127 = vector.broadcast %126 : vector<1x32xf32> to vector<8x32xf32>
    %128 = arith.addf %124, %127 : vector<8x32xf32>
    %129 = arith.addf %128, %21 : vector<8x32xf32>
    %c0_62 = arith.constant 0 : index
    %c0_63 = arith.constant 0 : index
    %c0_64 = arith.constant 0 : index
    %130 = vector.load %arg15[%c0_62, %c0_63, %c0_64] : memref<1x1x32xf32, #tpu.memory_space<vmem>>, vector<1x1x32xf32>
    %131 = vector.shape_cast %130 : vector<1x1x32xf32> to vector<1x32xf32>
    %c0_65 = arith.constant 0 : index
    %c0_66 = arith.constant 0 : index
    %c0_67 = arith.constant 0 : index
    %132 = vector.load %arg16[%c0_65, %c0_66, %c0_67] : memref<1x1x32xf32, #tpu.memory_space<vmem>>, vector<1x1x32xf32>
    %133 = vector.shape_cast %132 : vector<1x1x32xf32> to vector<1x32xf32>
    %cst_68 = arith.constant dense<0.000000e+00> : vector<8xf32>
    %134 = vector.multi_reduction <add>, %129, %cst_68 [1] : vector<8x32xf32> to vector<8xf32>
    %135 = vector.shape_cast %134 : vector<8xf32> to vector<8x1xf32>
    %cst_69 = arith.constant 3.200000e+01 : f32
    %136 = vector.broadcast %cst_69 : f32 to vector<8x1xf32>
    %137 = arith.divf %135, %136 : vector<8x1xf32>
    %138 = vector.broadcast %137 : vector<8x1xf32> to vector<8x32xf32>
    %139 = arith.subf %129, %138 : vector<8x32xf32>
    %140 = arith.mulf %139, %139 : vector<8x32xf32>
    %cst_70 = arith.constant dense<0.000000e+00> : vector<8xf32>
    %141 = vector.multi_reduction <add>, %140, %cst_70 [1] : vector<8x32xf32> to vector<8xf32>
    %142 = vector.shape_cast %141 : vector<8xf32> to vector<8x1xf32>
    %cst_71 = arith.constant 3.200000e+01 : f32
    %143 = vector.broadcast %cst_71 : f32 to vector<8x1xf32>
    %144 = arith.divf %142, %143 : vector<8x1xf32>
    %145 = vector.broadcast %137 : vector<8x1xf32> to vector<8x32xf32>
    %146 = arith.subf %129, %145 : vector<8x32xf32>
    %cst_72 = arith.constant 9.99999997E-7 : f32
    %147 = vector.broadcast %cst_72 : f32 to vector<8x1xf32>
    %148 = arith.addf %144, %147 : vector<8x1xf32>
    %149 = math.rsqrt %148 : vector<8x1xf32>
    %150 = vector.broadcast %149 : vector<8x1xf32> to vector<8x32xf32>
    %151 = arith.mulf %146, %150 : vector<8x32xf32>
    %152 = vector.broadcast %131 : vector<1x32xf32> to vector<8x32xf32>
    %153 = arith.mulf %151, %152 : vector<8x32xf32>
    %154 = vector.broadcast %133 : vector<1x32xf32> to vector<8x32xf32>
    %155 = arith.addf %153, %154 : vector<8x32xf32>
    %156 = vector.broadcast %4 : vector<8x1xf32> to vector<8x32xf32>
    %157 = arith.mulf %155, %156 : vector<8x32xf32>
    %158 = arith.truncf %157 : vector<8x32xf32> to vector<8x32xbf16>
    %159 = arith.truncf %22 : vector<8x32xf32> to vector<8x32xbf16>
    %c0_73 = arith.constant 0 : index
    %c0_74 = arith.constant 0 : index
    %c0_75 = arith.constant 0 : index
    %160 = vector.load %arg17[%c0_73, %c0_74, %c0_75] : memref<1x32x32xbf16, #tpu.memory_space<vmem>>, vector<1x32x32xbf16>
    %161 = vector.shape_cast %160 : vector<1x32x32xbf16> to vector<32x32xbf16>
    %cst_76 = arith.constant dense<0.000000e+00> : vector<8x32xf32>
    %162 = tpu.matmul %158, %161, %cst_76 {dimension_numbers = #tpu.dot_dimension_numbers<[1], [0], [0], [1], [0, 0, 1, 1], [], []>} : vector<8x32xbf16>, vector<32x32xbf16>, vector<8x32xf32> -> vector<8x32xf32>
    %c0_77 = arith.constant 0 : index
    %c0_78 = arith.constant 0 : index
    %c0_79 = arith.constant 0 : index
    %163 = vector.load %arg18[%c0_77, %c0_78, %c0_79] : memref<1x1x32xf32, #tpu.memory_space<vmem>>, vector<1x1x32xf32>
    %164 = vector.shape_cast %163 : vector<1x1x32xf32> to vector<1x32xf32>
    %165 = vector.broadcast %164 : vector<1x32xf32> to vector<8x32xf32>
    %166 = arith.addf %162, %165 : vector<8x32xf32>
    %c0_80 = arith.constant 0 : index
    %c0_81 = arith.constant 0 : index
    %c0_82 = arith.constant 0 : index
    %167 = vector.load %arg19[%c0_80, %c0_81, %c0_82] : memref<1x32x64xbf16, #tpu.memory_space<vmem>>, vector<1x32x64xbf16>
    %168 = vector.shape_cast %167 : vector<1x32x64xbf16> to vector<32x64xbf16>
    %cst_83 = arith.constant dense<0.000000e+00> : vector<8x64xf32>
    %169 = tpu.matmul %159, %168, %cst_83 {dimension_numbers = #tpu.dot_dimension_numbers<[1], [0], [0], [1], [0, 0, 1, 1], [], []>} : vector<8x32xbf16>, vector<32x64xbf16>, vector<8x64xf32> -> vector<8x64xf32>
    %c0_84 = arith.constant 0 : index
    %c0_85 = arith.constant 0 : index
    %c0_86 = arith.constant 0 : index
    %170 = vector.load %arg20[%c0_84, %c0_85, %c0_86] : memref<1x1x64xf32, #tpu.memory_space<vmem>>, vector<1x1x64xf32>
    %171 = vector.shape_cast %170 : vector<1x1x64xf32> to vector<1x64xf32>
    %172 = vector.broadcast %171 : vector<1x64xf32> to vector<8x64xf32>
    %173 = arith.addf %169, %172 : vector<8x64xf32>
    %174 = arith.truncf %166 : vector<8x32xf32> to vector<8x32xbf16>
    %175 = vector.extract_strided_slice %173 {offsets = [0, 0], sizes = [8, 32], strides = [1, 1]} : vector<8x64xf32> to vector<8x32xf32>
    %176 = arith.truncf %175 : vector<8x32xf32> to vector<8x32xbf16>
    %177 = vector.extract_strided_slice %173 {offsets = [0, 32], sizes = [8, 32], strides = [1, 1]} : vector<8x64xf32> to vector<8x32xf32>
    %178 = arith.truncf %177 : vector<8x32xf32> to vector<8x32xbf16>
    %179 = vector.extract_strided_slice %174 {offsets = [0, 0], sizes = [8, 8], strides = [1, 1]} : vector<8x32xbf16> to vector<8x8xbf16>
    %180 = vector.extract_strided_slice %176 {offsets = [0, 0], sizes = [8, 8], strides = [1, 1]} : vector<8x32xbf16> to vector<8x8xbf16>
    %181 = vector.extract_strided_slice %178 {offsets = [0, 0], sizes = [8, 8], strides = [1, 1]} : vector<8x32xbf16> to vector<8x8xbf16>
    %cst_87 = arith.constant dense<0.000000e+00> : vector<8x8xf32>
    %182 = tpu.matmul %179, %180, %cst_87 {dimension_numbers = #tpu.dot_dimension_numbers<[1], [1], [0], [0], [0, 0, 1, 0], [], []>} : vector<8x8xbf16>, vector<8x8xbf16>, vector<8x8xf32> -> vector<8x8xf32>
    %cst_88 = arith.constant -1.000000e+30 : f32
    %183 = vector.broadcast %cst_88 : f32 to vector<8x8xf32>
    %184 = arith.select %20, %183, %182 : vector<8x8xi1>, vector<8x8xf32>
    %cst_89 = arith.constant dense<0xFF800000> : vector<8xf32>
    %185 = vector.multi_reduction <maximumf>, %184, %cst_89 [1] : vector<8x8xf32> to vector<8xf32>
    %186 = vector.shape_cast %185 : vector<8xf32> to vector<8x1xf32>
    %187 = vector.broadcast %186 : vector<8x1xf32> to vector<8x8xf32>
    %188 = arith.subf %184, %187 : vector<8x8xf32>
    %189 = math.exp %188 : vector<8x8xf32>
    %cst_90 = arith.constant dense<0.000000e+00> : vector<8xf32>
    %190 = vector.multi_reduction <add>, %189, %cst_90 [1] : vector<8x8xf32> to vector<8xf32>
    %191 = vector.shape_cast %190 : vector<8xf32> to vector<8x1xf32>
    %192 = tpu.reciprocal %191 {approx = true} : vector<8x1xf32> -> vector<8x1xf32>
    %193 = vector.broadcast %192 : vector<8x1xf32> to vector<8x8xf32>
    %194 = arith.mulf %189, %193 : vector<8x8xf32>
    %195 = arith.truncf %194 : vector<8x8xf32> to vector<8x8xbf16>
    %cst_91 = arith.constant dense<0.000000e+00> : vector<8x8xf32>
    %196 = tpu.matmul %195, %181, %cst_91 {dimension_numbers = #tpu.dot_dimension_numbers<[1], [0], [0], [1], [0, 0, 1, 1], [], []>} : vector<8x8xbf16>, vector<8x8xbf16>, vector<8x8xf32> -> vector<8x8xf32>
    %c0_92 = arith.constant 0 : index
    %c0_93 = arith.constant 0 : index
    %197 = vector.load %arg34[%c0_92, %c0_93] : memref<8x32xf32, #tpu.memory_space<vmem>>, vector<8x8xf32>
    tpu.vector_store %arg34[%c0_92, %c0_93], %196 {strides = array<i32>} : memref<8x32xf32, #tpu.memory_space<vmem>>, vector<8x8xf32>,
    %198 = vector.extract_strided_slice %174 {offsets = [0, 8], sizes = [8, 8], strides = [1, 1]} : vector<8x32xbf16> to vector<8x8xbf16>
    %199 = vector.extract_strided_slice %176 {offsets = [0, 8], sizes = [8, 8], strides = [1, 1]} : vector<8x32xbf16> to vector<8x8xbf16>
    %200 = vector.extract_strided_slice %178 {offsets = [0, 8], sizes = [8, 8], strides = [1, 1]} : vector<8x32xbf16> to vector<8x8xbf16>
    %cst_94 = arith.constant dense<0.000000e+00> : vector<8x8xf32>
    %201 = tpu.matmul %198, %199, %cst_94 {dimension_numbers = #tpu.dot_dimension_numbers<[1], [1], [0], [0], [0, 0, 1, 0], [], []>} : vector<8x8xbf16>, vector<8x8xbf16>, vector<8x8xf32> -> vector<8x8xf32>
    %cst_95 = arith.constant -1.000000e+30 : f32
    %202 = vector.broadcast %cst_95 : f32 to vector<8x8xf32>
    %203 = arith.select %20, %202, %201 : vector<8x8xi1>, vector<8x8xf32>
    %cst_96 = arith.constant dense<0xFF800000> : vector<8xf32>
    %204 = vector.multi_reduction <maximumf>, %203, %cst_96 [1] : vector<8x8xf32> to vector<8xf32>
    %205 = vector.shape_cast %204 : vector<8xf32> to vector<8x1xf32>
    %206 = vector.broadcast %205 : vector<8x1xf32> to vector<8x8xf32>
    %207 = arith.subf %203, %206 : vector<8x8xf32>
    %208 = math.exp %207 : vector<8x8xf32>
    %cst_97 = arith.constant dense<0.000000e+00> : vector<8xf32>
    %209 = vector.multi_reduction <add>, %208, %cst_97 [1] : vector<8x8xf32> to vector<8xf32>
    %210 = vector.shape_cast %209 : vector<8xf32> to vector<8x1xf32>
    %211 = tpu.reciprocal %210 {approx = true} : vector<8x1xf32> -> vector<8x1xf32>
    %212 = vector.broadcast %211 : vector<8x1xf32> to vector<8x8xf32>
    %213 = arith.mulf %208, %212 : vector<8x8xf32>
    %214 = arith.truncf %213 : vector<8x8xf32> to vector<8x8xbf16>
    %cst_98 = arith.constant dense<0.000000e+00> : vector<8x8xf32>
    %215 = tpu.matmul %214, %200, %cst_98 {dimension_numbers = #tpu.dot_dimension_numbers<[1], [0], [0], [1], [0, 0, 1, 1], [], []>} : vector<8x8xbf16>, vector<8x8xbf16>, vector<8x8xf32> -> vector<8x8xf32>
    %c0_99 = arith.constant 0 : index
    %c8_100 = arith.constant 8 : index
    %216 = vector.load %arg34[%c0_99, %c8_100] : memref<8x32xf32, #tpu.memory_space<vmem>>, vector<8x8xf32>
    tpu.vector_store %arg34[%c0_99, %c8_100], %215 {strides = array<i32>} : memref<8x32xf32, #tpu.memory_space<vmem>>, vector<8x8xf32>,
    %217 = vector.extract_strided_slice %174 {offsets = [0, 16], sizes = [8, 8], strides = [1, 1]} : vector<8x32xbf16> to vector<8x8xbf16>
    %218 = vector.extract_strided_slice %176 {offsets = [0, 16], sizes = [8, 8], strides = [1, 1]} : vector<8x32xbf16> to vector<8x8xbf16>
    %219 = vector.extract_strided_slice %178 {offsets = [0, 16], sizes = [8, 8], strides = [1, 1]} : vector<8x32xbf16> to vector<8x8xbf16>
    %cst_101 = arith.constant dense<0.000000e+00> : vector<8x8xf32>
    %220 = tpu.matmul %217, %218, %cst_101 {dimension_numbers = #tpu.dot_dimension_numbers<[1], [1], [0], [0], [0, 0, 1, 0], [], []>} : vector<8x8xbf16>, vector<8x8xbf16>, vector<8x8xf32> -> vector<8x8xf32>
    %cst_102 = arith.constant -1.000000e+30 : f32
    %221 = vector.broadcast %cst_102 : f32 to vector<8x8xf32>
    %222 = arith.select %20, %221, %220 : vector<8x8xi1>, vector<8x8xf32>
    %cst_103 = arith.constant dense<0xFF800000> : vector<8xf32>
    %223 = vector.multi_reduction <maximumf>, %222, %cst_103 [1] : vector<8x8xf32> to vector<8xf32>
    %224 = vector.shape_cast %223 : vector<8xf32> to vector<8x1xf32>
    %225 = vector.broadcast %224 : vector<8x1xf32> to vector<8x8xf32>
    %226 = arith.subf %222, %225 : vector<8x8xf32>
    %227 = math.exp %226 : vector<8x8xf32>
    %cst_104 = arith.constant dense<0.000000e+00> : vector<8xf32>
    %228 = vector.multi_reduction <add>, %227, %cst_104 [1] : vector<8x8xf32> to vector<8xf32>
    %229 = vector.shape_cast %228 : vector<8xf32> to vector<8x1xf32>
    %230 = tpu.reciprocal %229 {approx = true} : vector<8x1xf32> -> vector<8x1xf32>
    %231 = vector.broadcast %230 : vector<8x1xf32> to vector<8x8xf32>
    %232 = arith.mulf %227, %231 : vector<8x8xf32>
    %233 = arith.truncf %232 : vector<8x8xf32> to vector<8x8xbf16>
    %cst_105 = arith.constant dense<0.000000e+00> : vector<8x8xf32>
    %234 = tpu.matmul %233, %219, %cst_105 {dimension_numbers = #tpu.dot_dimension_numbers<[1], [0], [0], [1], [0, 0, 1, 1], [], []>} : vector<8x8xbf16>, vector<8x8xbf16>, vector<8x8xf32> -> vector<8x8xf32>
    %c0_106 = arith.constant 0 : index
    %c16_107 = arith.constant 16 : index
    %235 = vector.load %arg34[%c0_106, %c16_107] : memref<8x32xf32, #tpu.memory_space<vmem>>, vector<8x8xf32>
    tpu.vector_store %arg34[%c0_106, %c16_107], %234 {strides = array<i32>} : memref<8x32xf32, #tpu.memory_space<vmem>>, vector<8x8xf32>,
    %236 = vector.extract_strided_slice %174 {offsets = [0, 24], sizes = [8, 8], strides = [1, 1]} : vector<8x32xbf16> to vector<8x8xbf16>
    %237 = vector.extract_strided_slice %176 {offsets = [0, 24], sizes = [8, 8], strides = [1, 1]} : vector<8x32xbf16> to vector<8x8xbf16>
    %238 = vector.extract_strided_slice %178 {offsets = [0, 24], sizes = [8, 8], strides = [1, 1]} : vector<8x32xbf16> to vector<8x8xbf16>
    %cst_108 = arith.constant dense<0.000000e+00> : vector<8x8xf32>
    %239 = tpu.matmul %236, %237, %cst_108 {dimension_numbers = #tpu.dot_dimension_numbers<[1], [1], [0], [0], [0, 0, 1, 0], [], []>} : vector<8x8xbf16>, vector<8x8xbf16>, vector<8x8xf32> -> vector<8x8xf32>
    %cst_109 = arith.constant -1.000000e+30 : f32
    %240 = vector.broadcast %cst_109 : f32 to vector<8x8xf32>
    %241 = arith.select %20, %240, %239 : vector<8x8xi1>, vector<8x8xf32>
    %cst_110 = arith.constant dense<0xFF800000> : vector<8xf32>
    %242 = vector.multi_reduction <maximumf>, %241, %cst_110 [1] : vector<8x8xf32> to vector<8xf32>
    %243 = vector.shape_cast %242 : vector<8xf32> to vector<8x1xf32>
    %244 = vector.broadcast %243 : vector<8x1xf32> to vector<8x8xf32>
    %245 = arith.subf %241, %244 : vector<8x8xf32>
    %246 = math.exp %245 : vector<8x8xf32>
    %cst_111 = arith.constant dense<0.000000e+00> : vector<8xf32>
    %247 = vector.multi_reduction <add>, %246, %cst_111 [1] : vector<8x8xf32> to vector<8xf32>
    %248 = vector.shape_cast %247 : vector<8xf32> to vector<8x1xf32>
    %249 = tpu.reciprocal %248 {approx = true} : vector<8x1xf32> -> vector<8x1xf32>
    %250 = vector.broadcast %249 : vector<8x1xf32> to vector<8x8xf32>
    %251 = arith.mulf %246, %250 : vector<8x8xf32>
    %252 = arith.truncf %251 : vector<8x8xf32> to vector<8x8xbf16>
    %cst_112 = arith.constant dense<0.000000e+00> : vector<8x8xf32>
    %253 = tpu.matmul %252, %238, %cst_112 {dimension_numbers = #tpu.dot_dimension_numbers<[1], [0], [0], [1], [0, 0, 1, 1], [], []>} : vector<8x8xbf16>, vector<8x8xbf16>, vector<8x8xf32> -> vector<8x8xf32>
    %c0_113 = arith.constant 0 : index
    %c24_114 = arith.constant 24 : index
    %254 = vector.load %arg34[%c0_113, %c24_114] : memref<8x32xf32, #tpu.memory_space<vmem>>, vector<8x8xf32>
    tpu.vector_store %arg34[%c0_113, %c24_114], %253 {strides = array<i32>} : memref<8x32xf32, #tpu.memory_space<vmem>>, vector<8x8xf32>,
    %c0_115 = arith.constant 0 : index
    %c0_116 = arith.constant 0 : index
    %255 = vector.load %arg34[%c0_115, %c0_116] : memref<8x32xf32, #tpu.memory_space<vmem>>, vector<8x32xf32>
    %256 = arith.truncf %255 : vector<8x32xf32> to vector<8x32xbf16>
    %c0_117 = arith.constant 0 : index
    %c0_118 = arith.constant 0 : index
    %c0_119 = arith.constant 0 : index
    %257 = vector.load %arg21[%c0_117, %c0_118, %c0_119] : memref<1x32x32xbf16, #tpu.memory_space<vmem>>, vector<1x32x32xbf16>
    %258 = vector.shape_cast %257 : vector<1x32x32xbf16> to vector<32x32xbf16>
    %cst_120 = arith.constant dense<0.000000e+00> : vector<8x32xf32>
    %259 = tpu.matmul %256, %258, %cst_120 {dimension_numbers = #tpu.dot_dimension_numbers<[1], [0], [0], [1], [0, 0, 1, 1], [], []>} : vector<8x32xbf16>, vector<32x32xbf16>, vector<8x32xf32> -> vector<8x32xf32>
    %c0_121 = arith.constant 0 : index
    %c0_122 = arith.constant 0 : index
    %c0_123 = arith.constant 0 : index
    %260 = vector.load %arg22[%c0_121, %c0_122, %c0_123] : memref<1x1x32xf32, #tpu.memory_space<vmem>>, vector<1x1x32xf32>
    %261 = vector.shape_cast %260 : vector<1x1x32xf32> to vector<1x32xf32>
    %262 = vector.broadcast %261 : vector<1x32xf32> to vector<8x32xf32>
    %263 = arith.addf %259, %262 : vector<8x32xf32>
    %264 = arith.addf %263, %157 : vector<8x32xf32>
    %c0_124 = arith.constant 0 : index
    %c0_125 = arith.constant 0 : index
    %c0_126 = arith.constant 0 : index
    %265 = vector.load %arg23[%c0_124, %c0_125, %c0_126] : memref<1x1x32xf32, #tpu.memory_space<vmem>>, vector<1x1x32xf32>
    %266 = vector.shape_cast %265 : vector<1x1x32xf32> to vector<1x32xf32>
    %c0_127 = arith.constant 0 : index
    %c0_128 = arith.constant 0 : index
    %c0_129 = arith.constant 0 : index
    %267 = vector.load %arg24[%c0_127, %c0_128, %c0_129] : memref<1x1x32xf32, #tpu.memory_space<vmem>>, vector<1x1x32xf32>
    %268 = vector.shape_cast %267 : vector<1x1x32xf32> to vector<1x32xf32>
    %cst_130 = arith.constant dense<0.000000e+00> : vector<8xf32>
    %269 = vector.multi_reduction <add>, %264, %cst_130 [1] : vector<8x32xf32> to vector<8xf32>
    %270 = vector.shape_cast %269 : vector<8xf32> to vector<8x1xf32>
    %cst_131 = arith.constant 3.200000e+01 : f32
    %271 = vector.broadcast %cst_131 : f32 to vector<8x1xf32>
    %272 = arith.divf %270, %271 : vector<8x1xf32>
    %273 = vector.broadcast %272 : vector<8x1xf32> to vector<8x32xf32>
    %274 = arith.subf %264, %273 : vector<8x32xf32>
    %275 = arith.mulf %274, %274 : vector<8x32xf32>
    %cst_132 = arith.constant dense<0.000000e+00> : vector<8xf32>
    %276 = vector.multi_reduction <add>, %275, %cst_132 [1] : vector<8x32xf32> to vector<8xf32>
    %277 = vector.shape_cast %276 : vector<8xf32> to vector<8x1xf32>
    %cst_133 = arith.constant 3.200000e+01 : f32
    %278 = vector.broadcast %cst_133 : f32 to vector<8x1xf32>
    %279 = arith.divf %277, %278 : vector<8x1xf32>
    %280 = vector.broadcast %272 : vector<8x1xf32> to vector<8x32xf32>
    %281 = arith.subf %264, %280 : vector<8x32xf32>
    %cst_134 = arith.constant 9.99999997E-7 : f32
    %282 = vector.broadcast %cst_134 : f32 to vector<8x1xf32>
    %283 = arith.addf %279, %282 : vector<8x1xf32>
    %284 = math.rsqrt %283 : vector<8x1xf32>
    %285 = vector.broadcast %284 : vector<8x1xf32> to vector<8x32xf32>
    %286 = arith.mulf %281, %285 : vector<8x32xf32>
    %287 = vector.broadcast %266 : vector<1x32xf32> to vector<8x32xf32>
    %288 = arith.mulf %286, %287 : vector<8x32xf32>
    %289 = vector.broadcast %268 : vector<1x32xf32> to vector<8x32xf32>
    %290 = arith.addf %288, %289 : vector<8x32xf32>
    %291 = vector.broadcast %4 : vector<8x1xf32> to vector<8x32xf32>
    %292 = arith.mulf %290, %291 : vector<8x32xf32>
    %293 = arith.truncf %292 : vector<8x32xf32> to vector<8x32xbf16>
    %c0_135 = arith.constant 0 : index
    %c0_136 = arith.constant 0 : index
    %c0_137 = arith.constant 0 : index
    %294 = vector.load %arg25[%c0_135, %c0_136, %c0_137] : memref<1x32x64xbf16, #tpu.memory_space<vmem>>, vector<1x32x64xbf16>
    %295 = vector.shape_cast %294 : vector<1x32x64xbf16> to vector<32x64xbf16>
    %cst_138 = arith.constant dense<0.000000e+00> : vector<8x64xf32>
    %296 = tpu.matmul %293, %295, %cst_138 {dimension_numbers = #tpu.dot_dimension_numbers<[1], [0], [0], [1], [0, 0, 1, 1], [], []>} : vector<8x32xbf16>, vector<32x64xbf16>, vector<8x64xf32> -> vector<8x64xf32>
    %c0_139 = arith.constant 0 : index
    %c0_140 = arith.constant 0 : index
    %c0_141 = arith.constant 0 : index
    %297 = vector.load %arg26[%c0_139, %c0_140, %c0_141] : memref<1x1x64xf32, #tpu.memory_space<vmem>>, vector<1x1x64xf32>
    %298 = vector.shape_cast %297 : vector<1x1x64xf32> to vector<1x64xf32>
    %299 = vector.broadcast %298 : vector<1x64xf32> to vector<8x64xf32>
    %300 = arith.addf %296, %299 : vector<8x64xf32>
    %cst_142 = arith.constant 0.000000e+00 : f32
    %301 = vector.broadcast %cst_142 : f32 to vector<8x64xf32>
    %302 = arith.maximumf %300, %301 : vector<8x64xf32>
    %303 = arith.truncf %302 : vector<8x64xf32> to vector<8x64xbf16>
    %c0_143 = arith.constant 0 : index
    %c0_144 = arith.constant 0 : index
    %c0_145 = arith.constant 0 : index
    %304 = vector.load %arg27[%c0_143, %c0_144, %c0_145] : memref<1x64x32xbf16, #tpu.memory_space<vmem>>, vector<1x64x32xbf16>
    %305 = vector.shape_cast %304 : vector<1x64x32xbf16> to vector<64x32xbf16>
    %cst_146 = arith.constant dense<0.000000e+00> : vector<8x32xf32>
    %306 = tpu.matmul %303, %305, %cst_146 {dimension_numbers = #tpu.dot_dimension_numbers<[1], [0], [0], [1], [0, 0, 1, 1], [], []>} : vector<8x64xbf16>, vector<64x32xbf16>, vector<8x32xf32> -> vector<8x32xf32>
    %c0_147 = arith.constant 0 : index
    %c0_148 = arith.constant 0 : index
    %c0_149 = arith.constant 0 : index
    %307 = vector.load %arg28[%c0_147, %c0_148, %c0_149] : memref<1x1x32xf32, #tpu.memory_space<vmem>>, vector<1x1x32xf32>
    %308 = vector.shape_cast %307 : vector<1x1x32xf32> to vector<1x32xf32>
    %309 = vector.broadcast %308 : vector<1x32xf32> to vector<8x32xf32>
    %310 = arith.addf %306, %309 : vector<8x32xf32>
    %311 = arith.addf %310, %292 : vector<8x32xf32>
    %c0_150 = arith.constant 0 : index
    %c0_151 = arith.constant 0 : index
    %c0_152 = arith.constant 0 : index
    %312 = vector.load %arg29[%c0_150, %c0_151, %c0_152] : memref<1x1x32xf32, #tpu.memory_space<vmem>>, vector<1x1x32xf32>
    %313 = vector.shape_cast %312 : vector<1x1x32xf32> to vector<1x32xf32>
    %c0_153 = arith.constant 0 : index
    %c0_154 = arith.constant 0 : index
    %c0_155 = arith.constant 0 : index
    %314 = vector.load %arg30[%c0_153, %c0_154, %c0_155] : memref<1x1x32xf32, #tpu.memory_space<vmem>>, vector<1x1x32xf32>
    %315 = vector.shape_cast %314 : vector<1x1x32xf32> to vector<1x32xf32>
    %cst_156 = arith.constant dense<0.000000e+00> : vector<8xf32>
    %316 = vector.multi_reduction <add>, %311, %cst_156 [1] : vector<8x32xf32> to vector<8xf32>
    %317 = vector.shape_cast %316 : vector<8xf32> to vector<8x1xf32>
    %cst_157 = arith.constant 3.200000e+01 : f32
    %318 = vector.broadcast %cst_157 : f32 to vector<8x1xf32>
    %319 = arith.divf %317, %318 : vector<8x1xf32>
    %320 = vector.broadcast %319 : vector<8x1xf32> to vector<8x32xf32>
    %321 = arith.subf %311, %320 : vector<8x32xf32>
    %322 = arith.mulf %321, %321 : vector<8x32xf32>
    %cst_158 = arith.constant dense<0.000000e+00> : vector<8xf32>
    %323 = vector.multi_reduction <add>, %322, %cst_158 [1] : vector<8x32xf32> to vector<8xf32>
    %324 = vector.shape_cast %323 : vector<8xf32> to vector<8x1xf32>
    %cst_159 = arith.constant 3.200000e+01 : f32
    %325 = vector.broadcast %cst_159 : f32 to vector<8x1xf32>
    %326 = arith.divf %324, %325 : vector<8x1xf32>
    %327 = vector.broadcast %319 : vector<8x1xf32> to vector<8x32xf32>
    %328 = arith.subf %311, %327 : vector<8x32xf32>
    %cst_160 = arith.constant 9.99999997E-7 : f32
    %329 = vector.broadcast %cst_160 : f32 to vector<8x1xf32>
    %330 = arith.addf %326, %329 : vector<8x1xf32>
    %331 = math.rsqrt %330 : vector<8x1xf32>
    %332 = vector.broadcast %331 : vector<8x1xf32> to vector<8x32xf32>
    %333 = arith.mulf %328, %332 : vector<8x32xf32>
    %334 = vector.broadcast %313 : vector<1x32xf32> to vector<8x32xf32>
    %335 = arith.mulf %333, %334 : vector<8x32xf32>
    %336 = vector.broadcast %315 : vector<1x32xf32> to vector<8x32xf32>
    %337 = arith.addf %335, %336 : vector<8x32xf32>
    %338 = vector.broadcast %4 : vector<8x1xf32> to vector<8x32xf32>
    %339 = arith.mulf %337, %338 : vector<8x32xf32>
    %c0_161 = arith.constant 0 : index
    %c0_162 = arith.constant 0 : index
    %340 = vector.load %arg32[%c0_161, %c0_162] : memref<8x32xf32, #tpu.memory_space<vmem>>, vector<8x32xf32>
    tpu.vector_store %arg32[%c0_161, %c0_162], %339 {strides = array<i32>} : memref<8x32xf32, #tpu.memory_space<vmem>>, vector<8x32xf32>,
    %c1_i32 = arith.constant 1 : i32
    %341 = arith.cmpi eq, %arg1, %c1_i32 : i32
    %342 = arith.extui %341 : i1 to i32
    %c0_i32_163 = arith.constant 0 : i32
    %343 = arith.cmpi ne, %342, %c0_i32_163 : i32
    scf.if %343 {
      %c0_164 = arith.constant 0 : index
      %c0_165 = arith.constant 0 : index
      %c0_166 = arith.constant 0 : index
      %344 = vector.load %arg31[%c0_164, %c0_165, %c0_166] : memref<1x8x32xf32, #tpu.memory_space<vmem>>, vector<1x8x32xf32>
      %345 = vector.shape_cast %344 : vector<1x8x32xf32> to vector<8x32xf32>
      %346 = vector.shape_cast %339 : vector<8x32xf32> to vector<1x8x32xf32>
      tpu.vector_store %arg31[%c0_164, %c0_165, %c0_166], %346 {strides = array<i32>} : memref<1x8x32xf32, #tpu.memory_space<vmem>>, vector<1x8x32xf32>,
    } else {
    }
    return
  }
  func.func @transform_0(%arg0: i32, %arg1: i32) -> (i32, i32, i32) {
    %c0_i32 = arith.constant 0 : i32
    %c0_i32_0 = arith.constant 0 : i32
    %c0_i32_1 = arith.constant 0 : i32
    return %arg0, %c0_i32, %c0_i32_0 : i32, i32, i32
  }
  func.func @transform_1(%arg0: i32, %arg1: i32) -> (i32, i32, i32) {
    %c0_i32 = arith.constant 0 : i32
    %c0_i32_0 = arith.constant 0 : i32
    %c0_i32_1 = arith.constant 0 : i32
    return %arg0, %c0_i32, %c0_i32_0 : i32, i32, i32
  }
  func.func @transform_2(%arg0: i32, %arg1: i32) -> (i32, i32, i32) {
    %c0_i32 = arith.constant 0 : i32
    %c0_i32_0 = arith.constant 0 : i32
    %c0_i32_1 = arith.constant 0 : i32
    return %arg0, %c0_i32, %c0_i32_0 : i32, i32, i32
  }
  func.func @transform_3(%arg0: i32, %arg1: i32) -> (i32, i32, i32) {
    %c0_i32 = arith.constant 0 : i32
    %c0_i32_0 = arith.constant 0 : i32
    %c0_i32_1 = arith.constant 0 : i32
    return %arg0, %c0_i32, %c0_i32_0 : i32, i32, i32
  }
  func.func @transform_4(%arg0: i32, %arg1: i32) -> (i32, i32, i32) {
    %c0_i32 = arith.constant 0 : i32
    %c0_i32_0 = arith.constant 0 : i32
    %c0_i32_1 = arith.constant 0 : i32
    return %arg0, %c0_i32, %c0_i32_0 : i32, i32, i32
  }
  func.func @transform_5(%arg0: i32, %arg1: i32) -> (i32, i32) {
    %c0_i32 = arith.constant 0 : i32
    %c0_i32_0 = arith.constant 0 : i32
    %c0_i32_1 = arith.constant 0 : i32
    return %c0_i32, %c0_i32_0 : i32, i32
  }
  func.func @transform_6(%arg0: i32, %arg1: i32) -> (i32, i32) {
    %c0_i32 = arith.constant 0 : i32
    %c0_i32_0 = arith.constant 0 : i32
    %c0_i32_1 = arith.constant 0 : i32
    return %c0_i32, %c0_i32_0 : i32, i32
  }
  func.func @transform_7(%arg0: i32, %arg1: i32) -> (i32, i32, i32) {
    %c0_i32 = arith.constant 0 : i32
    %c0_i32_0 = arith.constant 0 : i32
    %c0_i32_1 = arith.constant 0 : i32
    return %arg1, %c0_i32, %c0_i32_0 : i32, i32, i32
  }
  func.func @transform_8(%arg0: i32, %arg1: i32) -> (i32, i32, i32) {
    %c0_i32 = arith.constant 0 : i32
    %c0_i32_0 = arith.constant 0 : i32
    %c0_i32_1 = arith.constant 0 : i32
    return %arg1, %c0_i32, %c0_i32_0 : i32, i32, i32
  }
  func.func @transform_9(%arg0: i32, %arg1: i32) -> (i32, i32, i32) {
    %c0_i32 = arith.constant 0 : i32
    %c0_i32_0 = arith.constant 0 : i32
    %c0_i32_1 = arith.constant 0 : i32
    return %arg1, %c0_i32, %c0_i32_0 : i32, i32, i32
  }
  func.func @transform_10(%arg0: i32, %arg1: i32) -> (i32, i32, i32) {
    %c0_i32 = arith.constant 0 : i32
    %c0_i32_0 = arith.constant 0 : i32
    %c0_i32_1 = arith.constant 0 : i32
    return %arg1, %c0_i32, %c0_i32_0 : i32, i32, i32
  }
  func.func @transform_11(%arg0: i32, %arg1: i32) -> (i32, i32, i32) {
    %c0_i32 = arith.constant 0 : i32
    %c0_i32_0 = arith.constant 0 : i32
    %c0_i32_1 = arith.constant 0 : i32
    return %arg1, %c0_i32, %c0_i32_0 : i32, i32, i32
  }
  func.func @transform_12(%arg0: i32, %arg1: i32) -> (i32, i32, i32) {
    %c0_i32 = arith.constant 0 : i32
    %c0_i32_0 = arith.constant 0 : i32
    %c0_i32_1 = arith.constant 0 : i32
    return %arg1, %c0_i32, %c0_i32_0 : i32, i32, i32
  }
  func.func @transform_13(%arg0: i32, %arg1: i32) -> (i32, i32, i32) {
    %c0_i32 = arith.constant 0 : i32
    %c0_i32_0 = arith.constant 0 : i32
    %c0_i32_1 = arith.constant 0 : i32
    return %arg1, %c0_i32, %c0_i32_0 : i32, i32, i32
  }
  func.func @transform_14(%arg0: i32, %arg1: i32) -> (i32, i32, i32) {
    %c0_i32 = arith.constant 0 : i32
    %c0_i32_0 = arith.constant 0 : i32
    %c0_i32_1 = arith.constant 0 : i32
    return %arg1, %c0_i32, %c0_i32_0 : i32, i32, i32
  }
  func.func @transform_15(%arg0: i32, %arg1: i32) -> (i32, i32, i32) {
    %c0_i32 = arith.constant 0 : i32
    %c0_i32_0 = arith.constant 0 : i32
    %c0_i32_1 = arith.constant 0 : i32
    return %arg1, %c0_i32, %c0_i32_0 : i32, i32, i32
  }
  func.func @transform_16(%arg0: i32, %arg1: i32) -> (i32, i32, i32) {
    %c0_i32 = arith.constant 0 : i32
    %c0_i32_0 = arith.constant 0 : i32
    %c0_i32_1 = arith.constant 0 : i32
    return %arg1, %c0_i32, %c0_i32_0 : i32, i32, i32
  }
  func.func @transform_17(%arg0: i32, %arg1: i32) -> (i32, i32, i32) {
    %c0_i32 = arith.constant 0 : i32
    %c0_i32_0 = arith.constant 0 : i32
    %c0_i32_1 = arith.constant 0 : i32
    return %arg1, %c0_i32, %c0_i32_0 : i32, i32, i32
  }
  func.func @transform_18(%arg0: i32, %arg1: i32) -> (i32, i32, i32) {
    %c0_i32 = arith.constant 0 : i32
    %c0_i32_0 = arith.constant 0 : i32
    %c0_i32_1 = arith.constant 0 : i32
    return %arg1, %c0_i32, %c0_i32_0 : i32, i32, i32
  }
  func.func @transform_19(%arg0: i32, %arg1: i32) -> (i32, i32, i32) {
    %c0_i32 = arith.constant 0 : i32
    %c0_i32_0 = arith.constant 0 : i32
    %c0_i32_1 = arith.constant 0 : i32
    return %arg1, %c0_i32, %c0_i32_0 : i32, i32, i32
  }
  func.func @transform_20(%arg0: i32, %arg1: i32) -> (i32, i32, i32) {
    %c0_i32 = arith.constant 0 : i32
    %c0_i32_0 = arith.constant 0 : i32
    %c0_i32_1 = arith.constant 0 : i32
    return %arg1, %c0_i32, %c0_i32_0 : i32, i32, i32
  }
  func.func @transform_21(%arg0: i32, %arg1: i32) -> (i32, i32, i32) {
    %c0_i32 = arith.constant 0 : i32
    %c0_i32_0 = arith.constant 0 : i32
    %c0_i32_1 = arith.constant 0 : i32
    return %arg1, %c0_i32, %c0_i32_0 : i32, i32, i32
  }
  func.func @transform_22(%arg0: i32, %arg1: i32) -> (i32, i32, i32) {
    %c0_i32 = arith.constant 0 : i32
    %c0_i32_0 = arith.constant 0 : i32
    %c0_i32_1 = arith.constant 0 : i32
    return %arg1, %c0_i32, %c0_i32_0 : i32, i32, i32
  }
  func.func @transform_23(%arg0: i32, %arg1: i32) -> (i32, i32, i32) {
    %c0_i32 = arith.constant 0 : i32
    %c0_i32_0 = arith.constant 0 : i32
    %c0_i32_1 = arith.constant 0 : i32
    return %arg1, %c0_i32, %c0_i32_0 : i32, i32, i32
  }
  func.func @transform_24(%arg0: i32, %arg1: i32) -> (i32, i32, i32) {
    %c0_i32 = arith.constant 0 : i32
    %c0_i32_0 = arith.constant 0 : i32
    %c0_i32_1 = arith.constant 0 : i32
    return %arg1, %c0_i32, %c0_i32_0 : i32, i32, i32
  }
  func.func @transform_25(%arg0: i32, %arg1: i32) -> (i32, i32, i32) {
    %c0_i32 = arith.constant 0 : i32
    %c0_i32_0 = arith.constant 0 : i32
    %c0_i32_1 = arith.constant 0 : i32
    return %arg1, %c0_i32, %c0_i32_0 : i32, i32, i32
  }
  func.func @transform_26(%arg0: i32, %arg1: i32) -> (i32, i32, i32) {
    %c0_i32 = arith.constant 0 : i32
    %c0_i32_0 = arith.constant 0 : i32
    %c0_i32_1 = arith.constant 0 : i32
    return %arg1, %c0_i32, %c0_i32_0 : i32, i32, i32
  }
  func.func @transform_27(%arg0: i32, %arg1: i32) -> (i32, i32, i32) {
    %c0_i32 = arith.constant 0 : i32
    %c0_i32_0 = arith.constant 0 : i32
    %c0_i32_1 = arith.constant 0 : i32
    return %arg1, %c0_i32, %c0_i32_0 : i32, i32, i32
  }
  func.func @transform_28(%arg0: i32, %arg1: i32) -> (i32, i32, i32) {
    %c0_i32 = arith.constant 0 : i32
    %c0_i32_0 = arith.constant 0 : i32
    %c0_i32_1 = arith.constant 0 : i32
    return %arg1, %c0_i32, %c0_i32_0 : i32, i32, i32
  }
  func.func @transform_29(%arg0: i32, %arg1: i32) -> (i32, i32, i32) {
    %c0_i32 = arith.constant 0 : i32
    %c0_i32_0 = arith.constant 0 : i32
    %c0_i32_1 = arith.constant 0 : i32
    return %arg0, %c0_i32, %c0_i32_0 : i32, i32, i32
  }
}

</mosaic_0001>

<bundles_post_ra>
// kernel: _lambda_.1
= control target key start
LH: loop header
LB: loop body
LE: loop exit
PB: predicated region body
PF: predicated region fallthrough
CT: control target
= control target key end

     0   :  { %s3940_s6 = smov 1   ;;  %s3941_s10 = smov 2   ;;  %s4663_s0 = inlined_call_operand.smem [shape: u32[30], index: -1, kind: input, shape index: {}] }
   0x1   :  { %s3991_s5 = sld [smem:[%s4663_s0]]   ;;  %s3942_s14 = smov 3  }
   0x2   :  { %s3996_s9 = sld [smem:[%s4663_s0 + %s3940_s6]]   ;;  %s3943_s18 = smov 4  }
   0x3   :  { %s4001_s13 = sld [smem:[%s4663_s0 + %s3941_s10]]   ;;  %s3944_s22 = smov 5  }
   0x4   :  { %s4006_s17 = sld [smem:[%s4663_s0 + %s3942_s14]]   ;;  %s3945_s26 = smov 6  }
   0x5   :  { %s4011_s21 = sld [smem:[%s4663_s0 + %s3943_s18]]   ;;  %s3946_s30 = smov 7  }
   0x6   :  { %s4016_s25 = sld [smem:[%s4663_s0 + %s3944_s22]]   ;;  %s3947_s4 = smov 8  }
   0x7   :  { %4687 = sst [smem:[#allocation8_spill]] %s3991_s5  ;;  %s3948_s10 = smov 9  }
   0x8   :  { %4688 = sst [smem:[#allocation9_spill]] %s3996_s9  ;;  %s3949_s15 = smov 10  }
   0x9   :  { %4689 = sst [smem:[#allocation10_spill]] %s4001_s13  ;;  %s3950_s20 = smov 11  }
   0xa   :  { %4690 = sst [smem:[#allocation11_spill]] %s4006_s17  ;;  %s3952_s1 = smov 13  }
   0xb   :  { %4691 = sst [smem:[#allocation12_spill]] %s4011_s21  ;;  %s3953_s7 = smov 14  }
   0xc   :  { %4692 = sst [smem:[#allocation13_spill]] %s4016_s25  ;;  %s3955_s22 = smov 16  }
   0xd   :  { %s4021_s29 = sld [smem:[%s4663_s0 + %s3945_s26]]   ;;  %s3951_s26 = smov 12  }
   0xe   :  { %s4026_s3 = sld [smem:[%s4663_s0 + %s3946_s30]]   ;;  %s3956_s28 = smov 17  }
   0xf   :  { %s4031_s8 = sld [smem:[%s4663_s0 + %s3947_s4]]  }
  0x10   :  { %s4036_s14 = sld [smem:[%s4663_s0 + %s3948_s10]]  }
  0x11   :  { %s4041_s19 = sld [smem:[%s4663_s0 + %s3949_s15]]   ;;  %s3954_s15 = smov 15  }
  0x12   :  { %s4046_s24 = sld [smem:[%s4663_s0 + %s3950_s20]]  }
  0x13   :  { %4693 = sst [smem:[#allocation14_spill]] %s4021_s29 }
  0x14   :  { %4694 = sst [smem:[#allocation15_spill]] %s4026_s3 }
  0x15   :  { %4695 = sst [smem:[#allocation16_spill]] %s4031_s8 }
  0x16   :  { %4696 = sst [smem:[#allocation17_spill]] %s4036_s14 }
  0x17   :  { %4697 = sst [smem:[#allocation18_spill]] %s4041_s19 }
  0x18   :  { %4698 = sst [smem:[#allocation19_spill]] %s4046_s24 }
  0x19   :  { %s4051_s30 = sld [smem:[%s4663_s0 + %s3951_s26]]  }
  0x1a   :  { %s4056_s6 = sld [smem:[%s4663_s0 + %s3952_s1]]  }
  0x1b   :  { %s4061_s12 = sld [smem:[%s4663_s0 + %s3953_s7]]   ;;  %s3957_s7 = smov 18  }
  0x1c   :  { %s4066_s20 = sld [smem:[%s4663_s0 + %s3954_s15]]   ;;  %s3958_s15 = smov 19  }
  0x1d   :  { %s4071_s27 = sld [smem:[%s4663_s0 + %s3955_s22]]   ;;  %s3959_s22 = smov 20  }
  0x1e   :  { %s4076_s4 = sld [smem:[%s4663_s0 + %s3956_s28]]   ;;  %s3960_s28 = smov 21  }
  0x1f   :  { %4699 = sst [smem:[#allocation20_spill]] %s4051_s30 }
  0x20   :  { %4700 = sst [smem:[#allocation21_spill]] %s4056_s6 }
  0x21   :  { %4701 = sst [smem:[#allocation22_spill]] %s4061_s12 }
  0x22   :  { %4702 = sst [smem:[#allocation23_spill]] %s4066_s20 }
  0x23   :  { %4703 = sst [smem:[#allocation24_spill]] %s4071_s27 }
  0x24   :  { %4704 = sst [smem:[#allocation25_spill]] %s4076_s4 }
  0x25   :  { %s4081_s29 = sld [smem:[%s4663_s0 + %s3957_s7]]   ;;  %s3961_s7 = smov 22  }
  0x26   :  { %s4086_s25 = sld [smem:[%s4663_s0 + %s3958_s15]]   ;;  %s3962_s15 = smov 23  }
  0x27   :  { %s4091_s27 = sld [smem:[%s4663_s0 + %s3959_s22]]   ;;  %s3963_s22 = smov 24  }
  0x28   :  { %s4096_s4 = sld [smem:[%s4663_s0 + %s3960_s28]]   ;;  %s3964_s28 = smov 25  }
  0x2b   :  { %4705 = sst [smem:[#allocation26_spill]] %s4081_s29 }
  0x2c   :  { %4706 = sst [smem:[#allocation27_spill]] %s4086_s25 }
  0x2d   :  { %4707 = sst [smem:[#allocation28_spill]] %s4091_s27 }
  0x2e   :  { %4708 = sst [smem:[#allocation29_spill]] %s4096_s4 }
  0x2f   :  { %s4101_s29 = sld [smem:[%s4663_s0 + %s3961_s7]]   ;;  %s3965_s7 = smov 26  }
  0x30   :  { %s4106_s25 = sld [smem:[%s4663_s0 + %s3962_s15]]   ;;  %s3966_s15 = smov 27  }
  0x31   :  { %s4111_s27 = sld [smem:[%s4663_s0 + %s3963_s22]]   ;;  %s3967_s22 = smov 28  }
  0x32   :  { %s4116_s4 = sld [smem:[%s4663_s0 + %s3964_s28]]   ;;  %s3968_s28 = smov 29  }
  0x35   :  { %4709 = sst [smem:[#allocation30_spill]] %s4101_s29 }
  0x36   :  { %4710 = sst [smem:[#allocation31_spill]] %s4106_s25 }
  0x37   :  { %4711 = sst [smem:[#allocation32_spill]] %s4111_s27 }
  0x38   :  { %4712 = sst [smem:[#allocation33_spill]] %s4116_s4 }
  0x39   :  { %s4121_s29 = sld [smem:[%s4663_s0 + %s3965_s7]]  }
  0x3a   :  { %s4126_s25 = sld [smem:[%s4663_s0 + %s3966_s15]]  }
  0x3b   :  { %s4131_s27 = sld [smem:[%s4663_s0 + %s3967_s22]]  }
  0x3c   :  { %s4136_s4 = sld [smem:[%s4663_s0 + %s3968_s28]]  }
  0x3f   :  { %4713 = sst [smem:[#allocation34_spill]] %s4121_s29 }
  0x40   :  { %4714 = sst [smem:[#allocation35_spill]] %s4126_s25 }
  0x41   :  { %4715 = sst [smem:[#allocation36_spill]] %s4131_s27 }
  0x42   :  { %4716 = sst [smem:[#allocation37_spill]] %s4136_s4 }
  0x43   :  { %64 = vsyncpa [#allocation6], 0 }
  0x44   :  { %66 = vsyncpa [#allocation6 + $0x1], 0  ;;  %s4138_s7 = smov 0   ;;  %s4140_s10 = smov 0  }
  0x45   :  { %s4142_s11 = smov 0   ;;  %s4144_s15 = smov 0  }
  0x46   :  { %s4146_s16 = smov 0   ;;  %s4148_s18 = smov 0  }
  0x47   :  { %s4150_s22 = smov 0   ;;  %s4152_s23 = smov 0  }
  0x48 LB: > { %4717 = sst [smem:[#allocation38_spill]] %s3910_s7  ;;  %s3353_s0 = sadd.s32 4294967295, %s3938_s23   ;;  %s3938_s23 = sphi %s4152_s23, %s72_s23   ;;  %s3934_s22 = sphi %s4150_s22, %s4828_s22   ;;  %s3930_s18 = sphi %s4148_s18, %s4827_s18   ;;  %s3926_s16 = sphi %s4146_s16, %s4826_s16   ;;  %s3922_s15 = sphi %s4144_s15, %s4825_s15   ;;  %s3918_s11 = sphi %s4142_s11, %s4824_s11   ;;  %s3914_s10 = sphi %s4140_s10, %s4823_s10   ;;  %s3910_s7 = sphi %s4138_s7, %s4822_s7  }
  0x49   : > { %4718 = sst [smem:[#allocation39_spill]] %s3914_s10  ;;  %s3354_s26 = sadd.s32 4294967294, %s3938_s23  }
  0x4a   : > { %4719 = sst [smem:[#allocation40_spill]] %s3918_s11  ;;  %s81_s28 = sadd.s32 1, %s3930_s18 }
  0x4b   : > { %4720 = sst [smem:[#allocation41_spill]] %s3922_s15  ;;  %p82_p0 = scmp.ge.s32.totalorder %s81_s28, 2 }
  0x4c   : > { %4721 = sst [smem:[#allocation42_spill]] %s3926_s16  ;;  %s84_s1 = sadd.s32 1, %s3934_s22 }
  0x4d   : > { %4722 = sst [smem:[#allocation43_spill]] %s3930_s18  ;;  %p845_p1 = scmp.ne.s32.totalorder %s3918_s11, %s3914_s10 }
  0x4e   : > { %4723 = sst [smem:[#allocation44_spill]] %s3934_s22  ;;  %p846_p2 = scmp.eq.s32.totalorder %s3353_s0, 3 }
  0x4f   : > { %4724 = sst [smem:[#allocation45_spill]] %s3938_s23  ;;  %s4830_s28 = smov (%p82_p0, %s81_s28), 0 }
  0x50   : > { %4725 = sst [smem:[#allocation46_spill]] %s4830_s28  ;;  %s4832_s1 = smov (!%p82_p0, %s84_s1), %s3934_s22 }
  0x51   : > { %p4187_p3 = por %p846_p2, %p845_p1  ;;  %p851_p4 = scmp.ne.s32.totalorder %s3914_s10, %s3910_s7 }
  0x52   : > { %p86_p5 = scmp.ge.s32.totalorder %s4832_s1, 2  ;;  %p852_p6 = scmp.eq.s32.totalorder %s3354_s26, 3 }
  0x53   : > { %s4726_s2 = scalar_select %p4187_p3, 1, 0 }
  0x54   : > { %p3357_p7 = scmp.ge.s32.totalorder %s3938_s23, 1  ;;  %p1057_p8 = scmp.lt.s32.totalorder %s3938_s23, 5 }
  0x55   : > { %4727 = sst [smem:[#allocation47_spill]] %s4726_s2  ;;  %s4834_s1 = smov (%p86_p5, %s4832_s1), 0 }
  0x56   : > { %4728 = sst [smem:[#allocation48_spill]] %s4834_s1  ;;  %p4197_p9 = por %p852_p6, %p851_p4 }
  0x57   : > { %p1058_p10 = pnand %p3357_p7, %p1057_p8  ;;  %s832_s0 = ssub.s32 %s3934_s22, %s4834_s1 }
  0x58   : > { %s4729_s18 = scalar_select %p4197_p9, 1, 0 }
  0x59   : > { %s835_s28 = sadd.s32 1, %s3918_s11  ;;  %p833_p11 = scmp.eq.s32.totalorder %s832_s0, 0 }
  0x5a   : > { %4730 = sst [smem:[#allocation49_spill]] %s4729_s18  ;;  %1061 = sbr.rel (%p1058_p10) target bundleno = 4765 (0x129d), region = 136 }
  0x5b   : > { %s4205_s4 = scalar_select %p833_p11, %s3918_s11, %s835_s28  }
  0x5d   : > { %4731 = sst [smem:[#allocation50_spill]] %s4205_s4 }
  0x61   : > { %s4738_s3 = sld [smem:[#allocation15_spill]]  ;;  %s4739_s14 = sld [smem:[#allocation17_spill]] }
  0x62   : > { %s4667_s26 = sand.u32 1, %s3914_s10   ;;  %p1228_p12 = scmp.lt.s32.totalorder %s3926_s16, 1 }
  0x63   : > { %s4741_s24 = sld [smem:[#allocation19_spill]]  ;;  %s4211_s28 = sshll.u32 %s4667_s26, 3 }
  0x64   : > { %4742 = sst [smem:[#allocation51_spill]] %s4211_s28  ;;  %p1246_p13 = scmp.lt.s32.totalorder %s3922_s15, 1 }
  0x65   : > { %s4215_s0 = scalar_select %p1228_p12, %s3926_s16, 1 }
  0x66   : > { %s4218_s1 = scalar_select %p1246_p13, %s3922_s15, 1 }
  0x67   : > { %4745 = sst [smem:[#allocation52_spill]] %s4215_s0  ;;  %s4747_s20 = sld [smem:[#allocation23_spill]] }
  0x68   : > { %s4221_s26 = sshll.u32 %s4215_s0, 3  ;;  %s4749_s22 = sld [smem:[#allocation24_spill]] }
  0x69   : > { %4748 = sst [smem:[#allocation53_spill]] %s4221_s26  ;;  %s4750_s11 = sld [smem:[#allocation25_spill]] }
  0x6a   : > { %s4751_s7 = sld [smem:[#allocation26_spill]]  ;;  %s4752_s2 = sld [smem:[#allocation27_spill]] }
  0x6b   : > { %s4753_s16 = sld [smem:[#allocation28_spill]]  ;;  %s4754_s28 = sld [smem:[#allocation29_spill]] }
  0x6c   : > { %s3442_s27 = sshll.u32 %s4218_s1, 4  ;;  %s4755_s25 = sld [smem:[#allocation30_spill]] }
  0x6d   : > { %s4756_s4 = sld [smem:[#allocation31_spill]]  ;;  %s4237_s13 = scalar_lea.vmem %s4738_s3, %s3442_s27 }
  0x6e   : > { %4757 = sst [smem:[#allocation54_spill]] %s4237_s13  ;;  %s4758_s5 = sld [smem:[#allocation32_spill]] }
  0x6f   : > { %s4240_s18 = scalar_lea.vmem %s4739_s14, %s3442_s27  ;;  %s4760_s9 = sld [smem:[#allocation33_spill]] }
  0x70   : > { %4759 = sst [smem:[#allocation55_spill]] %s4240_s18  ;;  %s4245_s10 = scalar_lea.vmem %s4741_s24, %s3442_s27 }
  0x71   : > { %4761 = sst [smem:[#allocation56_spill]] %s4245_s10  ;;  %s4762_s15 = sld [smem:[#allocation34_spill]] }
  0x72   : > { %s4763_s21 = sld [smem:[#allocation35_spill]]  ;;  %s4764_s29 = sld [smem:[#allocation36_spill]] }
  0x73   : > { %s4254_s13 = scalar_lea.vmem %s4747_s20, %s3442_s27  ;;  %s1283_s26 = scalar_lea.vmem %s4749_s22, %s4218_s1 }
  0x74   : > { %4766 = sst [smem:[#allocation57_spill]] %s4254_s13  ;;  %s4259_s14 = scalar_lea.vmem %s4750_s11, %s3442_s27 }
  0x75   : > { %s1291_s18 = scalar_lea.vmem %s4751_s7, %s4218_s1  ;;  %s4264_s23 = scalar_lea.vmem %s4752_s2, %s3442_s27 }
  0x76   : > { %s1299_s24 = scalar_lea.vmem %s4753_s16, %s4218_s1  ;;  %s1302_s10 = scalar_lea.vmem %s4754_s28, %s4218_s1 }
  0x77   : > { %s1305_s19 = scalar_lea.vmem %s4755_s25, %s4218_s1  ;;  %s4273_s17 = scalar_lea.vmem %s4756_s4, %s3442_s27 }
  0x78   : > { %s1313_s30 = scalar_lea.vmem %s4758_s5, %s4218_s1  ;;  %s3449_s0 = sshll.u32 %s4218_s1, 5 }
  0x79   : > { %s4279_s6 = scalar_lea.vmem %s4760_s9, %s3449_s0  ;;  %s1321_s8 = scalar_lea.vmem %s4762_s15, %s4218_s1 }
  0x7a   : > { %s1324_s12 = scalar_lea.vmem %s4763_s21, %s4218_s1  ;;  %s1327_s20 = scalar_lea.vmem %s4764_s29, %s4218_s1 }
  0x7b   : > { %s4767_s22 = sld [smem:[#allocation41_spill]] }
  0x81   : > { %p3378_p0 = scmp.ne.s32.totalorder %s4767_s22, 0 }
  0x82   : > { %vm1334_vm0 = vcmask (!%p3378_p0), 261120   ;;  %s4768_s7 = sld [smem:[#allocation9_spill]] (!%p3378_p0)  ;;  %s4769_s11 = sld [smem:[#allocation53_spill]] (!%p3378_p0) }
  0x83   : > { %1332 = sbr.rel (%p3378_p0) target bundleno = 452 (0x1c4), region = 140  ;;  %s4771_s16 = sld [smem:[#allocation8_spill]] (!%p3378_p0) }
  0x84   : > { %s4773_s27 = sld [smem:[#allocation13_spill]] (!%p3378_p0)  ;;  %s4774_s5 = sld [smem:[#allocation14_spill]] (!%p3378_p0) }
  0x88   : > { %s4770_s2 = scalar_lea.vmem (!%p3378_p0), %s4768_s7, %s4769_s11 }
  0x89   : > { %v1336_v0 = vld [vmem:[%s4770_s2] sm:$0xff] (!%p3378_p0)  ;;  %s4772_s25 = scalar_lea.vmem (!%p3378_p0), %s4771_s16, %s4769_s11 }
  0x8a   : > { %v1333_v1 = vld [vmem:[%s4772_s25] sm:$0xff]  ;;  %v1339_v2 = vsel %vm1334_vm0, %v1336_v0, 0.0 }
  0x8b   : > { %1335 = vst.msk [vmem:[#allocation2] sm:$0xff] %vm1334_vm0, %v1333_v1  ;;  %1340 = vadd.xlane.f32.xlu0 %v1339_v2  ;;  %v3379_v12 = vld [vmem:[%s4773_s27] ss:$0 sm:$0xff] }
  0x8c   : > { %v3380_v14 = vld [vmem:[%s4774_s5] ss:$0 sm:$0xff] }
 0x118   : > { %v1341_v3 = vpop.xlane.xlu0 %1340 }
 0x119   : > { %v1343_v4 = vmul.f32 0.03125, %v1341_v3 }
 0x11b   : > { %v1344_v5 = vsub.f32 %v1336_v0, %v1343_v4 }
 0x11d   : > { %v1345_v6 = vmul.f32 %v1344_v5, %v1344_v5 }
 0x11f   : > { %v1346_v7 = vsel %vm1334_vm0, %v1345_v6, 0.0 }
 0x120   : > { %1347 = vadd.xlane.f32.xlu0 %v1346_v7 }
 0x1ad   : > { %v1348_v8 = vpop.xlane.xlu0 %1347 }
 0x1ae   : > { %v1349_v9 = vmul.f32 0.03125, %v1348_v8 }
 0x1b0   : > { %v1350_v10 = vadd.f32 1e-06, %v1349_v9 }
 0x1b2   : > { %3785 = vrsqrt.f32 %v1350_v10 }
 0x1bc   : > { %v3786_v11 = vpop.eup %3785 }
 0x1bd   : > { %v1352_v13 = vmul.f32 %v3786_v11, %v1344_v5 }
 0x1bf   : > { %v1359_v15 = vmul.f32 %v3379_v12, %v1352_v13 }
 0x1c1   : > { %v1366_v16 = vadd.f32 %v3380_v14, %v1359_v15 }
 0x1c3   : > { %1367 = vst.msk [vmem:[#allocation3] sm:$0xff] %vm1334_vm0, %v1366_v16 }
 0x1c4 PF: > { %s4775_s9 = sld [smem:[#allocation55_spill]]  ;;  %s4776_s21 = sld [smem:[#allocation54_spill]]  ;;  %v3969_v18 = vmov 0.0   ;;  %vm3970_vm1 = vmmov 0   ;;  %v4309_v21 = vld [vmem:[#allocation2] sm:$0xff]  ;;  %vm1417_vm2 = vcmask 261120   ;;  %v1372_v49 = vlaneseq }
 0x1c5   : > { %3516 = vmatprep.subr.bf16.mxu1 %v3969_v18  ;;  %3508 = vmatprep.subr.bf16.mxu0 %v3969_v18  ;;  %s4777_s29 = sld [smem:[#allocation18_spill]]  ;;  %s4778_s3 = sld [smem:[#allocation16_spill]]  ;;  %v1393_v23 = vpack.c.bf16 %v4309_v21, %v4309_v21  ;;  %vm1526_vm3 = vcmask 64512   ;;  %v3974_v39 = vmov 0   ;;  %vm1592_vm8 = vcmask 1043456  }
 0x1c6   : > { %3520 = vmatprep.mubr.msk.bf16.mxu1 %vm3970_vm1, %v3969_v18  ;;  %3512 = vmatprep.mubr.msk.bf16.mxu0 %vm3970_vm1, %v3969_v18  ;;  %s3971_s28 = smov 112   ;;  %s3972_s0 = smov 120   ;;  %v4367_v51 = vshrl.u32 %v1372_v49, 7  ;;  %v1380_v55 = vand.u32 127, %v1372_v49  ;;  %vm1753_vm9 = vcmask 130112   ;;  %vm1870_vm10 = vcmask 195712  }
 0x1c7   : > { %s3973_s22 = smov 104   ;;  %3787 = vset.pattern.permute.xlu0 %v3974_v39  ;;  %s4781_s7 = sld [smem:[#allocation10_spill]]  ;;  %vm1987_vm11 = vcmask 261312   ;;  %vm2895_vm14 = vcmask 523264  }
 0x1c8   : > { %s4782_s11 = sld [smem:[#allocation52_spill]]  ;;  %v1374_v52 = vsub.s32 0, %v4367_v51  ;;  %vm1381_vm6 = vcmp.gt.s32.totalorder %v1380_v55, %v4367_v51  ;;  %s3975_s16 = smov 96  }
 0x1c9   : > { %s3976_s25 = smov 80   ;;  %s3977_s27 = smov 72  }
 0x1ca   : > { %v3788_v17 = vld [vmem:[%s4775_s9] sm:$0xff]   ;;  %v3790_v20 = vld [vmem:[%s4775_s9 + $0x8] sm:$0xff]   ;;  %s3978_s5 = smov 88   ;;  %s4786_s9 = sld [smem:[#allocation56_spill]] }
 0x1cb   : > { %v3789_v19 = vld [vmem:[%s4776_s21] sm:$0xff]   ;;  %3517 = vmatpush3.bf16.msra.mxu1 %v3788_v17  ;;  %v3791_v22 = vld [vmem:[%s4776_s21 + $0x8] sm:$0xff]   ;;  %s4779_s4 = scalar_lea.vmem %s4777_s29, %s4218_s1  ;;  %s4780_s15 = scalar_lea.vmem %s4778_s3, %s4218_s1 }
 0x1cc   : > { %3518 = vmatprep.subr.bf16.mxu1 %v3969_v18  ;;  %3509 = vmatpush3.bf16.msra.mxu0 %v3789_v19  ;;  %v3385_v24 = vld [vmem:[%s4779_s4] ss:$0 sm:$0xff]  ;;  %s3979_s21 = smov 8   ;;  %s3980_s29 = smov 16  }
 0x1cd   : > { %3510 = vmatprep.subr.bf16.mxu0 %v3969_v18  ;;  %v3381_v25 = vld [vmem:[%s4780_s15] ss:$0 sm:$0xff]  ;;  %s3981_s3 = smov 24   ;;  %s4787_s4 = sld [smem:[#allocation20_spill]] }
 0x1ce   : > { %s4783_s2 = scalar_lea.vmem %s4781_s7, %s4782_s11  ;;  %s4789_s7 = sld [smem:[#allocation12_spill]] }
 0x1cf   : > { %3519 = vmatpush3.bf16.msra.mxu1 %v3790_v20  ;;  %v1369_v50 = vld [vmem:[%s4783_s2] sm:$0x1]  ;;  %s4790_s2 = sld [smem:[#allocation53_spill]]  ;;  %s4794_s13 = sld [smem:[#allocation22_spill]] }
 0x1d0   : > { %3511 = vmatpush3.bf16.msra.mxu0 %v3791_v22  ;;  %3530 = vmatprep.subr.bf16.mxu1 %v3969_v18  ;;  %vm1370_vm4 = vcmp.gt.f32.partialorder %v1369_v50, 0.5 }
 0x1d1   : > { %3524 = vmatprep.subr.bf16.mxu0 %v3969_v18  ;;  %v1371_v53 = vsel %vm1370_vm4, 1, %v3974_v39 }
 0x1d2   : > { %3521 = vmatmul.mubr.msk.bf16.vlgmr.msra.gmra.mrb[0].mxu1 %vm1417_vm2, %v1393_v23  ;;  %v1375_v54 = vrot.slane %v1371_v53, %v1374_v52 }
 0x1d3   : > { %3513 = vmatmul.mubr.msk.bf16.vlgmr.msra.gmra.mrb[0].mxu0 %vm1417_vm2, %v1393_v23  ;;  %3532 = vmatprep.mubr.msk.bf16.mxu1 %vm3970_vm1, %v3969_v18  ;;  %s4788_s15 = scalar_lea.vmem %s4787_s4, %s4218_s1 }
 0x1d4   : > { %3526 = vmatprep.mubr.msk.bf16.mxu0 %vm3970_vm1, %v3969_v18  ;;  %vm1376_vm5 = vcmp.eq.s32.totalorder %v1375_v54, 1 }
 0x1d5   : > { %vm4374_vm7 = vmor %vm1376_vm5, %vm1381_vm6  ;;  %s4792_s4 = scalar_lea.vmem %s4789_s7, %s4790_s2  ;;  %s4797_s2 = scalar_lea.vmem %s4794_s13, %s4218_s1 }
 0x1d6   : > { %s4799_s13 = sld [smem:[#allocation11_spill]] }
 0x2a5   : > { %v1518_v26 = vpop.f32.mrb[0].mxu1 }
 0x2a6   : > { %v1519_v27 = vadd.f32 %v3385_v24, %v1518_v26  ;;  %v3522_v28 = vpop.f32.mrb[1].mxu1  ;;  %v1455_v29 = vpop.f32.mrb[0].mxu0 }
 0x2a7   : > { %v1521_v30 = vpop.f32.mrb[2].mxu1  ;;  %v1456_v31 = vadd.f32 %v3381_v25, %v1455_v29  ;;  %v3514_v32 = vpop.f32.mrb[1].mxu0 }
 0x2a8   : > { %v4331_v33 = vpack.c.bf16 %v1519_v27, %v1519_v27  ;;  %v3523_v34 = vpop.f32.mrb[3].mxu1  ;;  %v1458_v35 = vpop.f32.mrb[2].mxu0 }
 0x2a9   : > { %v3515_v36 = vpop.f32.mrb[3].mxu0  ;;  %v1524_v37 = vpack.c.bf16 %v1456_v31, %v1456_v31 }
 0x2aa   : > { %1757 = vrot.lane.b32.xlu1 %v4331_v33, %s3971_s28  ;;  %1640 = vrot.lane.b32.xlu0 %v4331_v33, %s3972_s0  ;;  %v1531_v38 = vsel %vm1526_vm3, %v4331_v33, 0 }
 0x2ab   : > { %3525 = vmatpush3.bf16.xpose.msra.mxu0 %v1531_v38 }
 0x2ac   : > { %3536 = vmatprep.subr.bf16.mxu0 %v3969_v18 }
 0x2ae   : > { %1755 = vrot.lane.b32.xlu1 %v1524_v37, %s3971_s28  ;;  %1638 = vrot.lane.b32.xlu0 %v1524_v37, %s3972_s0 }
 0x2b2   : > { %1872 = vrot.lane.b32.xlu1 %v1524_v37, %s3973_s22  ;;  %1874 = vrot.lane.b32.xlu0 %v4331_v33, %s3973_s22 }
 0x2b3   : > { %3527 = vmatmul.mubr.msk.bf16.vlgmr.msra.gmra.mrb[4].mxu0 %vm1526_vm3, %v1524_v37 }
 0x2b4   : > { %3538 = vmatprep.mubr.msk.bf16.mxu0 %vm3970_vm1, %v3969_v18 }
 0x31c   : > { %v1641_v40 = vpop.permute.xlu0 %1640  ;;  %v1758_v42 = vpop.permute.xlu1 %1757 }
 0x31d   : > { %v1646_v41 = vsel %vm1526_vm3, %v1641_v40, 0  ;;  %v1763_v44 = vsel %vm1526_vm3, %v1758_v42, 0 }
 0x31e   : > { %3537 = vmatpush3.bf16.xpose.msra.mxu0 %v1646_v41 }
 0x31f   : > { %3548 = vmatprep.subr.bf16.mxu0 %v3969_v18 }
 0x320   : > { %v1639_v43 = vpop.permute.xlu0 %1638  ;;  %v1756_v46 = vpop.permute.xlu1 %1755 }
 0x324   : > { %v1875_v45 = vpop.permute.xlu0 %1874  ;;  %v1873_v48 = vpop.permute.xlu1 %1872 }
 0x325   : > { %3539 = vmatmul.mubr.msk.bf16.vlgmr.msra.gmra.mrb[8].mxu0 %vm1526_vm3, %v1639_v43  ;;  %v1880_v47 = vsel %vm1526_vm3, %v1875_v45, 0 }
 0x326   : > { %3549 = vmatpush3.bf16.xpose.msra.mxu0 %v1763_v44  ;;  %3550 = vmatprep.mubr.msk.bf16.mxu0 %vm3970_vm1, %v3969_v18 }
 0x327   : > { %3560 = vmatprep.subr.bf16.mxu0 %v3969_v18 }
 0x32d   : > { %3551 = vmatmul.mubr.msk.bf16.vlgmr.msra.gmra.mrb[12].mxu0 %vm1526_vm3, %v1756_v46 }
 0x32e   : > { %3561 = vmatpush3.bf16.xpose.msra.mxu0 %v1880_v47  ;;  %3562 = vmatprep.mubr.msk.bf16.mxu0 %vm3970_vm1, %v3969_v18 }
 0x32f   : > { %3572 = vmatprep.subr.bf16.mxu0 %v3969_v18 }
 0x335   : > { %3563 = vmatmul.mubr.msk.bf16.vlgmr.msra.gmra.mrb[16].mxu0 %vm1526_vm3, %v1873_v48 }
 0x336   : > { %3576 = vmatprep.mubr.msk.bf16.mxu0 %vm3970_vm1, %v3969_v18 }
 0x386   : > { %v1567_v57 = vpop.f32.mrb[4].mxu0 }
 0x387   : > { %v1573_v58 = vsel %vm4374_vm7, -1e+30, %v1567_v57  ;;  %v3528_v59 = vpop.f32.mrb[5].mxu0 }
 0x388   : > { %v1570_v60 = vpop.f32.mrb[6].mxu0  ;;  %v1574_v61 = vsel %vm1526_vm3, %v1573_v58, -inf }
 0x389   : > { %v3529_v62 = vpop.f32.mrb[7].mxu0  ;;  %1575 = vmax.xlane.f32.xlu0 %v1574_v61 }
 0x3f8   : > { %v1682_v63 = vpop.f32.mrb[8].mxu0 }
 0x3f9   : > { %v1688_v0 = vsel %vm4374_vm7, -1e+30, %v1682_v63  ;;  %v3540_v1 = vpop.f32.mrb[9].mxu0 }
 0x3fa   : > { %v1685_v2 = vpop.f32.mrb[10].mxu0  ;;  %v1689_v3 = vsel %vm1526_vm3, %v1688_v0, -inf }
 0x3fb   : > { %v3541_v4 = vpop.f32.mrb[11].mxu0  ;;  %1690 = vmax.xlane.f32.xlu1 %v1689_v3 }
 0x400   : > { %v1799_v5 = vpop.f32.mrb[12].mxu0 }
 0x401   : > { %v1805_v6 = vsel %vm4374_vm7, -1e+30, %v1799_v5  ;;  %v3552_v7 = vpop.f32.mrb[13].mxu0 }
 0x402   : > { %v1802_v8 = vpop.f32.mrb[14].mxu0  ;;  %v1806_v9 = vsel %vm1526_vm3, %v1805_v6, -inf }
 0x403   : > { %v3553_v10 = vpop.f32.mrb[15].mxu0  ;;  %1807 = vmax.xlane.f32.xlu0 %v1806_v9 }
 0x404   : > { %v3792_v10 = vld [vmem:[%s4786_s9] sm:$0xff]  }
 0x405   : > { %3573 = vmatpush3.bf16.msra.mxu0 %v3792_v10 }
 0x406   : > { %3574 = vmatprep.subr.bf16.mxu0 %v3969_v18 }
 0x408   : > { %v1916_v11 = vpop.f32.mrb[16].mxu0 }
 0x409   : > { %v1922_v12 = vsel %vm4374_vm7, -1e+30, %v1916_v11  ;;  %v3564_v13 = vpop.f32.mrb[17].mxu0  ;;  %v3793_v11 = vld [vmem:[%s4786_s9 + $0x8] sm:$0xff]   ;;  %s4791_s9 = sld [smem:[#allocation57_spill]] }
 0x40a   : > { %v1919_v14 = vpop.f32.mrb[18].mxu0  ;;  %v1923_v15 = vsel %vm1526_vm3, %v1922_v12, -inf  ;;  %3575 = vmatpush3.bf16.msra.mxu0 %v3793_v11 }
 0x40b   : > { %v3565_v16 = vpop.f32.mrb[19].mxu0  ;;  %1924 = vmax.xlane.f32.xlu0 %v1923_v15  ;;  %3588 = vmatprep.subr.bf16.mxu0 %v3969_v18 }
 0x416   : > { %v1576_v17 = vpop.xlane.xlu0 %1575 }
 0x417   : > { %v1577_v19 = vsub.f32 %v1573_v58, %v1576_v17 }
 0x419   : > { %v1578_v20 = vmul.f32 1.442695, %v1577_v19 }
 0x41b   : > { %3806 = vpow2.f32 %v1578_v20 }
 0x425   : > { %v3807_v22 = vpop.eup %3806 }
 0x426   : > { %v1580_v23 = vsel %vm1526_vm3, %v3807_v22, 0.0 }
 0x427   : > { %1581 = vadd.xlane.f32.xlu1 %v1580_v23 }
 0x438   : > { %1587 = vrot.lane.b32.xlu1 %v4331_v33, %s3975_s16 }
 0x488   : > { %v1691_v24 = vpop.xlane.xlu1 %1690 }
 0x489   : > { %v1692_v25 = vsub.f32 %v1688_v0, %v1691_v24 }
 0x48b   : > { %v1693_v26 = vmul.f32 1.442695, %v1692_v25 }
 0x48d   : > { %3808 = vpow2.f32 %v1693_v26 }
 0x490   : > { %v1808_v27 = vpop.xlane.xlu0 %1807 }
 0x491   : > { %v1809_v28 = vsub.f32 %v1805_v6, %v1808_v27  ;;  %v3397_v27 = vld [vmem:[%s4788_s15] ss:$0 sm:$0xff]  ;;  %s4793_s15 = sld [smem:[#allocation21_spill]] }
 0x493   : > { %v1810_v29 = vmul.f32 1.442695, %v1809_v28 }
 0x495   : > { %3810 = vpow2.f32 %v1810_v29 }
 0x497   : > { %v3809_v30 = vpop.eup %3808  ;;  %s4796_s7 = scalar_lea.vmem %s4793_s15, %s4218_s1 }
 0x498   : > { %v1925_v31 = vpop.xlane.xlu0 %1924  ;;  %v1695_v32 = vsel %vm1526_vm3, %v3809_v30, 0.0 }
 0x499   : > { %v1926_v34 = vsub.f32 %v1922_v12, %v1925_v31  ;;  %1696 = vadd.xlane.f32.xlu0 %v1695_v32 }
 0x49b   : > { %v1927_v35 = vmul.f32 1.442695, %v1926_v34 }
 0x49d   : > { %3812 = vpow2.f32 %v1927_v35 }
 0x49f   : > { %v3811_v36 = vpop.eup %3810 }
 0x4a0   : > { %v1812_v37 = vsel %vm1526_vm3, %v3811_v36, 0.0 }
 0x4a1   : > { %1813 = vadd.xlane.f32.xlu1 %v1812_v37 }
 0x4a7   : > { %v3813_v38 = vpop.eup %3812 }
 0x4a8   : > { %v1929_v40 = vsel %vm1526_vm3, %v3813_v38, 0.0 }
 0x4a9   : > { %1930 = vadd.xlane.f32.xlu0 %v1929_v40 }
 0x4b2   : > { %1818 = vrot.lane.b32.xlu1 %v4331_v33, %s3976_s25 }
 0x4b4   : > { %v1582_v41 = vpop.xlane.xlu1 %1581 }
 0x4b5   : > { %3814 = vrcp.f32 %v1582_v41 }
 0x4b6   : > { %1935 = vrot.lane.b32.xlu1 %v4331_v33, %s3977_s27 }
 0x4b8   : > { %v1588_v42 = vpop.permute.xlu1 %1587 }
 0x4b9   : > { %v1594_v43 = vsel %vm1592_vm8, %v1588_v42, 0  ;;  %v3794_v42 = vld [vmem:[%s4259_s14] sm:$0xff]  }
 0x4ba   : > { %3531 = vmatpush3.bf16.msra.mxu1 %v1594_v43  ;;  %v1368_v43 = vld [vmem:[%s4792_s4] sm:$0xff] }
 0x4bb   : > { %3542 = vmatprep.subr.bf16.mxu1 %v3969_v18 }
 0x4bf   : > { %v3815_v44 = vpop.eup %3814  ;;  %1701 = vrot.lane.b32.xlu0 %v4331_v33, %s3978_s5 }
 0x4c0   : > { %v1584_v45 = vmul.f32 %v3815_v44, %v3807_v22  ;;  %v3796_v44 = vld [vmem:[%s4791_s9] sm:$0xff]  }
 0x4c2   : > { %v1585_v46 = vpack.c.bf16 %v1584_v45, %v1584_v45  ;;  %v3795_v45 = vld [vmem:[%s4259_s14 + $0x8] sm:$0xff]  }
 0x4c4   : > { %3533 = vmatmul.mubr.msk.bf16.vlgmr.msra.gmra.mrb[4].mxu1 %vm1526_vm3, %v1585_v46  ;;  %v1392_v46 = vld [vmem:[#allocation3] sm:$0xff] }
 0x4c5   : > { %3544 = vmatprep.mubr.msk.bf16.mxu1 %vm3970_vm1, %v3969_v18 }
 0x526   : > { %v1697_v47 = vpop.xlane.xlu0 %1696 }
 0x527   : > { %3816 = vrcp.f32 %v1697_v47  ;;  %v3797_v47 = vld [vmem:[%s4791_s9 + $0x8] sm:$0xff]  }
 0x52e   : > { %v1814_v48 = vpop.xlane.xlu1 %1813 }
 0x52f   : > { %3818 = vrcp.f32 %v1814_v48 }
 0x531   : > { %v3817_v49 = vpop.eup %3816 }
 0x532   : > { %v1699_v53 = vmul.f32 %v3817_v49, %v3809_v30  ;;  %v1819_v56 = vpop.permute.xlu1 %1818 }
 0x533   : > { %v1824_v58 = vsel %vm1592_vm8, %v1819_v56, 0  ;;  %v3402_v56 = vld [vmem:[%s4797_s2] ss:$0 sm:$0xff] }
 0x534   : > { %v1700_v33 = vpack.c.bf16 %v1699_v53, %v1699_v53 }
 0x536   : > { %v1931_v50 = vpop.xlane.xlu0 %1930  ;;  %v1936_v60 = vpop.permute.xlu1 %1935 }
 0x537   : > { %3820 = vrcp.f32 %v1931_v50  ;;  %v1941_v63 = vsel %vm1592_vm8, %v1936_v60, 0 }
 0x539   : > { %v3819_v57 = vpop.eup %3818 }
 0x53a   : > { %v1702_v54 = vpop.permute.xlu0 %1701  ;;  %v1816_v59 = vmul.f32 %v3819_v57, %v3811_v36 }
 0x53b   : > { %v1707_v55 = vsel %vm1592_vm8, %v1702_v54, 0  ;;  %v3401_v54 = vld [vmem:[%s4796_s7] ss:$0 sm:$0xff] }
 0x53c   : > { %3543 = vmatpush3.bf16.msra.mxu1 %v1707_v55  ;;  %v1817_v61 = vpack.c.bf16 %v1816_v59, %v1816_v59 }
 0x53d   : > { %3554 = vmatprep.subr.bf16.mxu1 %v3969_v18 }
 0x53f   : > { %3545 = vmatmul.mubr.msk.bf16.vlgmr.msra.gmra.mrb[8].mxu1 %vm1526_vm3, %v1700_v33 }
 0x540   : > { %3555 = vmatpush3.bf16.msra.mxu1 %v1824_v58  ;;  %3556 = vmatprep.mubr.msk.bf16.mxu1 %vm3970_vm1, %v3969_v18 }
 0x541   : > { %3566 = vmatprep.subr.bf16.mxu1 %v3969_v18  ;;  %v3821_v62 = vpop.eup %3820 }
 0x542   : > { %v1933_v0 = vmul.f32 %v3821_v62, %v3813_v38 }
 0x544   : > { %v1934_v1 = vpack.c.bf16 %v1933_v0, %v1933_v0 }
 0x547   : > { %3557 = vmatmul.mubr.msk.bf16.vlgmr.msra.gmra.mrb[12].mxu1 %vm1526_vm3, %v1817_v61  ;;  %v3407_v61 = vld [vmem:[%s1291_s18] ss:$0 sm:$0xff]  ;;  %s4800_s18 = scalar_lea.vmem %s4799_s13, %s4782_s11 }
 0x548   : > { %3567 = vmatpush3.bf16.msra.mxu1 %v1941_v63  ;;  %3568 = vmatprep.mubr.msk.bf16.mxu1 %vm3970_vm1, %v3969_v18 }
 0x549   : > { %3580 = vmatprep.subr.bf16.mxu1 %v3969_v18 }
 0x54f   : > { %3569 = vmatmul.mubr.msk.bf16.vlgmr.msra.gmra.mrb[16].mxu1 %vm1526_vm3, %v1934_v1 }
 0x550   : > { %3584 = vmatprep.mubr.msk.bf16.mxu1 %vm3970_vm1, %v3969_v18  ;;  %3581 = vmatpush3.bf16.msra.mxu1 %v3796_v44 }
 0x551   : > { %3582 = vmatprep.subr.bf16.mxu1 %v3969_v18 }
 0x554   : > { %3583 = vmatpush3.bf16.msra.mxu1 %v3797_v47 }
 0x555   : > { %3596 = vmatprep.subr.bf16.mxu1 %v3969_v18 }
 0x597   : > { %v1630_v2 = vpop.f32.mrb[4].mxu1 }
 0x598   : > { %1636 = vst.msk [vmem:[#allocation4] sm:$0xff] %vm1526_vm3, %v1630_v2  ;;  %v3534_v3 = vpop.f32.mrb[5].mxu1 }
 0x599   : > { %v1633_v4 = vpop.f32.mrb[6].mxu1 }
 0x59a   : > { %v3535_v5 = vpop.f32.mrb[7].mxu1 }
 0x59b   : > { %v3403_v5 = vld [vmem:[%s1283_s26] ss:$0 sm:$0xff] }
 0x612   : > { %v1743_v6 = vpop.f32.mrb[8].mxu1 }
 0x613   : > { %1750 = vrot.lane.b32.xlu0 %v1743_v6, %s3979_s21  ;;  %v3546_v7 = vpop.f32.mrb[9].mxu1 }
 0x614   : > { %v1746_v8 = vpop.f32.mrb[10].mxu1 }
 0x615   : > { %v3547_v9 = vpop.f32.mrb[11].mxu1 }
 0x61a   : > { %v1860_v12 = vpop.f32.mrb[12].mxu1 }
 0x61b   : > { %1867 = vrot.lane.b32.xlu1 %v1860_v12, %s3980_s29  ;;  %v3558_v13 = vpop.f32.mrb[13].mxu1 }
 0x61c   : > { %v1863_v14 = vpop.f32.mrb[14].mxu1 }
 0x61d   : > { %v3559_v15 = vpop.f32.mrb[15].mxu1 }
 0x622   : > { %v1977_v16 = vpop.f32.mrb[16].mxu1 }
 0x623   : > { %1984 = vrot.lane.b32.xlu0 %v1977_v16, %s3981_s3  ;;  %v3570_v17 = vpop.f32.mrb[17].mxu1 }
 0x624   : > { %v1980_v19 = vpop.f32.mrb[18].mxu1 }
 0x625   : > { %v3571_v20 = vpop.f32.mrb[19].mxu1 }
 0x685   : > { %v1751_v22 = vpop.permute.xlu0 %1750 }
 0x686   : > { %1754 = vst.msk [vmem:[#allocation4] sm:$0xff] %vm1753_vm9, %v1751_v22 }
 0x68d   : > { %v1868_v23 = vpop.permute.xlu1 %1867 }
 0x68e   : > { %1871 = vst.msk [vmem:[#allocation4] sm:$0xff] %vm1870_vm10, %v1868_v23  ;;  %v1383_v23 = vld [vmem:[%s4800_s18] sm:$0x1] }
 0x68f   : > { %vm1384_vm12 = vcmp.gt.f32.partialorder %v1383_v23, 0.5 }
 0x695   : > { %v1985_v24 = vpop.permute.xlu0 %1984 }
 0x696   : > { %1988 = vst.msk [vmem:[#allocation4] sm:$0xff] %vm1987_vm11, %v1985_v24  ;;  %v1385_v24 = vsel %vm1384_vm12, 1, %v3974_v39 }
 0x69d   : > { %v1989_v25 = vld [vmem:[#allocation4] sm:$0xff] }
 0x69e   : > { %v1990_v26 = vpack.c.bf16 %v1989_v25, %v1989_v25  ;;  %v1389_v25 = vrot.slane %v1385_v24, %v1374_v52 }
 0x6a0   : > { %3577 = vmatmul.mubr.msk.bf16.vlgmr.msra.gmra.mrb[20].mxu0 %vm1417_vm2, %v1990_v26  ;;  %vm1390_vm13 = vcmp.eq.s32.totalorder %v1389_v25, 1 }
 0x6a1   : > { %3592 = vmatprep.mubr.msk.bf16.mxu0 %vm3970_vm1, %v3969_v18  ;;  %3589 = vmatpush3.bf16.msra.mxu0 %v3794_v42 }
 0x6a2   : > { %3590 = vmatprep.subr.bf16.mxu0 %v3969_v18 }
 0x6a5   : > { %3591 = vmatpush3.bf16.msra.mxu0 %v3795_v45 }
 0x6a6   : > { %3602 = vmatprep.subr.bf16.mxu0 %v3969_v18 }
 0x773   : > { %v2051_v28 = vpop.f32.mrb[20].mxu0 }
 0x774   : > { %v2052_v29 = vadd.f32 %v3397_v27, %v2051_v28  ;;  %v3578_v30 = vpop.f32.mrb[21].mxu0 }
 0x775   : > { %v2054_v31 = vpop.f32.mrb[22].mxu0 }
 0x776   : > { %v3579_v32 = vpop.f32.mrb[23].mxu0  ;;  %v2057_v34 = vadd.f32 %v2052_v29, %v4309_v21  ;;  %v2095_v21 = vpack.c.bf16 %v1392_v46, %v1392_v46 }
 0x778   : > { %v2060_v35 = vsel %vm1417_vm2, %v2057_v34, 0.0  ;;  %3593 = vmatmul.mubr.msk.bf16.vlgmr.msra.gmra.mrb[24].mxu0 %vm1417_vm2, %v2095_v21 }
 0x779   : > { %2061 = vadd.xlane.f32.xlu1 %v2060_v35  ;;  %3604 = vmatprep.mubr.msk.bf16.mxu0 %vm3970_vm1, %v3969_v18 }
 0x806   : > { %v2062_v36 = vpop.xlane.xlu1 %2061 }
 0x807   : > { %v2064_v37 = vmul.f32 0.03125, %v2062_v36 }
 0x809   : > { %v2065_v38 = vsub.f32 %v2057_v34, %v2064_v37 }
 0x80b   : > { %v2066_v40 = vmul.f32 %v2065_v38, %v2065_v38 }
 0x80d   : > { %v2067_v41 = vsel %vm1417_vm2, %v2066_v40, 0.0 }
 0x80e   : > { %2068 = vadd.xlane.f32.xlu0 %v2067_v41 }
 0x824   : > { %2090 = vperm.xlu0 %3787, %v1368_v43  }
 0x84b   : > { %v2222_v62 = vpop.f32.mrb[24].mxu0 }
 0x84c   : > { %v2223_v63 = vadd.f32 %v3407_v61, %v2222_v62  ;;  %v3594_v0 = vpop.f32.mrb[25].mxu0 }
 0x84d   : > { %v2225_v1 = vpop.f32.mrb[26].mxu0 }
 0x84e   : > { %v4475_v2 = vpack.c.bf16 %v2223_v63, %v2223_v63  ;;  %v3595_v3 = vpop.f32.mrb[27].mxu0 }
 0x850   : > { %2342 = vrot.lane.b32.xlu1 %v4475_v2, %s3972_s0  ;;  %v2234_v4 = vsel %vm1526_vm3, %v4475_v2, 0 }
 0x854   : > { %2458 = vrot.lane.b32.xlu1 %v4475_v2, %s3971_s28 }
 0x89b   : > { %v2069_v48 = vpop.xlane.xlu0 %2068 }
 0x89c   : > { %v2070_v49 = vmul.f32 0.03125, %v2069_v48 }
 0x89e   : > { %v2071_v50 = vadd.f32 1e-06, %v2070_v49 }
 0x8a0   : > { %3822 = vrsqrt.f32 %v2071_v50 }
 0x8a3   : > { %v4462_v57 = vpop.permute.xlu0 %2090 }
 0x8aa   : > { %v3823_v53 = vpop.eup %3822 }
 0x8ab   : > { %v2073_v55 = vmul.f32 %v3823_v53, %v2065_v38 }
 0x8ad   : > { %v2080_v33 = vmul.f32 %v3401_v54, %v2073_v55 }
 0x8af   : > { %v2087_v58 = vadd.f32 %v3402_v56, %v2080_v33 }
 0x8b1   : > { %v4465_v59 = vmul.f32 %v4462_v57, %v2087_v58 }
 0x8b3   : > { %v2094_v60 = vpack.c.bf16 %v4465_v59, %v4465_v59 }
 0x8b5   : > { %3585 = vmatmul.mubr.msk.bf16.vlgmr.msra.gmra.mrb[20].mxu1 %vm1417_vm2, %v2094_v60 }
 0x8b6   : > { %3598 = vmatprep.mubr.msk.bf16.mxu1 %vm3970_vm1, %v3969_v18  ;;  %3597 = vmatpush3.bf16.xpose.msra.mxu1 %v2234_v4 }
 0x8b7   : > { %3608 = vmatprep.subr.bf16.mxu1 %v3969_v18 }
 0x8c2   : > { %v2343_v10 = vpop.permute.xlu1 %2342 }
 0x8c3   : > { %v2348_v13 = vsel %vm1526_vm3, %v2343_v10, 0 }
 0x8c6   : > { %v2459_v14 = vpop.permute.xlu1 %2458 }
 0x8c7   : > { %v2464_v16 = vsel %vm1526_vm3, %v2459_v14, 0 }
 0x988   : > { %v2156_v6 = vpop.f32.mrb[20].mxu1 }
 0x989   : > { %v2157_v7 = vadd.f32 %v3403_v5, %v2156_v6  ;;  %v3586_v8 = vpop.f32.mrb[21].mxu1 }
 0x98a   : > { %v2159_v9 = vpop.f32.mrb[22].mxu1 }
 0x98b   : > { %v2228_v11 = vpack.c.bf16 %v2157_v7, %v2157_v7  ;;  %v3587_v12 = vpop.f32.mrb[23].mxu1 }
 0x98d   : > { %2340 = vrot.lane.b32.xlu1 %v2228_v11, %s3972_s0  ;;  %3599 = vmatmul.mubr.msk.bf16.vlgmr.msra.gmra.mrb[24].mxu1 %vm1526_vm3, %v2228_v11 }
 0x98e   : > { %3609 = vmatpush3.bf16.xpose.msra.mxu1 %v2348_v13  ;;  %3610 = vmatprep.mubr.msk.bf16.mxu1 %vm3970_vm1, %v3969_v18 }
 0x98f   : > { %3620 = vmatprep.subr.bf16.mxu1 %v3969_v18 }
 0x991   : > { %2456 = vrot.lane.b32.xlu1 %v2228_v11, %s3971_s28 }
 0x995   : > { %2574 = vrot.lane.b32.xlu1 %v4475_v2, %s3973_s22 }
 0x999   : > { %2572 = vrot.lane.b32.xlu1 %v2228_v11, %s3973_s22 }
 0x9ff   : > { %v2341_v15 = vpop.permute.xlu1 %2340 }
 0xa00   : > { %3611 = vmatmul.mubr.msk.bf16.vlgmr.msra.gmra.mrb[28].mxu1 %vm1526_vm3, %v2341_v15 }
 0xa01   : > { %3621 = vmatpush3.bf16.xpose.msra.mxu1 %v2464_v16  ;;  %3622 = vmatprep.mubr.msk.bf16.mxu1 %vm3970_vm1, %v3969_v18 }
 0xa02   : > { %3632 = vmatprep.subr.bf16.mxu1 %v3969_v18 }
 0xa03   : > { %v2457_v17 = vpop.permute.xlu1 %2456 }
 0xa07   : > { %v2575_v19 = vpop.permute.xlu1 %2574 }
 0xa08   : > { %v2580_v20 = vsel %vm1526_vm3, %v2575_v19, 0  ;;  %3623 = vmatmul.mubr.msk.bf16.vlgmr.msra.gmra.mrb[32].mxu1 %vm1526_vm3, %v2457_v17 }
 0xa09   : > { %3633 = vmatpush3.bf16.xpose.msra.mxu1 %v2580_v20  ;;  %3634 = vmatprep.mubr.msk.bf16.mxu1 %vm3970_vm1, %v3969_v18 }
 0xa0a   : > { %3644 = vmatprep.subr.bf16.mxu1 %v3969_v18 }
 0xa0b   : > { %v2573_v22 = vpop.permute.xlu1 %2572 }
 0xa10   : > { %3635 = vmatmul.mubr.msk.bf16.vlgmr.msra.gmra.mrb[36].mxu1 %vm1526_vm3, %v2573_v22 }
 0xa11   : > { %3648 = vmatprep.mubr.msk.bf16.mxu1 %vm3970_vm1, %v3969_v18 }
 0xa60   : > { %v2270_v26 = vpop.f32.mrb[24].mxu1 }
 0xa61   : > { %v2276_v27 = vsel %vm1390_vm13, -1e+30, %v2270_v26  ;;  %v3600_v28 = vpop.f32.mrb[25].mxu1 }
 0xa62   : > { %v2273_v29 = vpop.f32.mrb[26].mxu1  ;;  %v2277_v30 = vsel %vm1526_vm3, %v2276_v27, -inf }
 0xa63   : > { %2278 = vmax.xlane.f32.xlu1 %v2277_v30  ;;  %v3601_v31 = vpop.f32.mrb[27].mxu1 }
 0xad3   : > { %v2384_v32 = vpop.f32.mrb[28].mxu1 }
 0xad4   : > { %v2390_v34 = vsel %vm1390_vm13, -1e+30, %v2384_v32  ;;  %v3612_v35 = vpop.f32.mrb[29].mxu1 }
 0xad5   : > { %v2387_v36 = vpop.f32.mrb[30].mxu1  ;;  %v2391_v39 = vsel %vm1526_vm3, %v2390_v34, -inf }
 0xad6   : > { %2392 = vmax.xlane.f32.xlu0 %v2391_v39  ;;  %v3613_v51 = vpop.f32.mrb[31].mxu1 }
 0xadb   : > { %v2500_v52 = vpop.f32.mrb[32].mxu1 }
 0xadc   : > { %v2506_v37 = vsel %vm1390_vm13, -1e+30, %v2500_v52  ;;  %v3624_v38 = vpop.f32.mrb[33].mxu1 }
 0xadd   : > { %v2503_v40 = vpop.f32.mrb[34].mxu1  ;;  %v2507_v41 = vsel %vm1526_vm3, %v2506_v37, -inf }
 0xade   : > { %2508 = vmax.xlane.f32.xlu1 %v2507_v41  ;;  %v3625_v42 = vpop.f32.mrb[35].mxu1  ;;  %v3798_v40 = vld [vmem:[%s4264_s23] sm:$0xff]   ;;  %v3799_v41 = vld [vmem:[%s4264_s23 + $0x8] sm:$0xff]  }
 0xadf   : > { %3645 = vmatpush3.bf16.msra.mxu1 %v3798_v40 }
 0xae0   : > { %3646 = vmatprep.subr.bf16.mxu1 %v3969_v18 }
 0xae3   : > { %v2616_v43 = vpop.f32.mrb[36].mxu1  ;;  %3647 = vmatpush3.bf16.msra.mxu1 %v3799_v41 }
 0xae4   : > { %v2622_v44 = vsel %vm1390_vm13, -1e+30, %v2616_v43  ;;  %v3636_v45 = vpop.f32.mrb[37].mxu1  ;;  %3660 = vmatprep.subr.bf16.mxu1 %v3969_v18 }
 0xae5   : > { %v2619_v46 = vpop.f32.mrb[38].mxu1  ;;  %v2623_v21 = vsel %vm1526_vm3, %v2622_v44, -inf }
 0xae6   : > { %2624 = vmax.xlane.f32.xlu0 %v2623_v21  ;;  %v3637_v47 = vpop.f32.mrb[39].mxu1 }
 0xaf0   : > { %v2279_v48 = vpop.xlane.xlu1 %2278 }
 0xaf1   : > { %v2280_v49 = vsub.f32 %v2276_v27, %v2279_v48 }
 0xaf3   : > { %v2281_v50 = vmul.f32 1.442695, %v2280_v49 }
 0xaf5   : > { %3824 = vpow2.f32 %v2281_v50 }
 0xaff   : > { %v3825_v53 = vpop.eup %3824 }
 0xb00   : > { %v2283_v54 = vsel %vm1526_vm3, %v3825_v53, 0.0 }
 0xb01   : > { %2284 = vadd.xlane.f32.xlu1 %v2283_v54 }
 0xb12   : > { %2290 = vrot.lane.b32.xlu1 %v4475_v2, %s3975_s16 }
 0xb63   : > { %v2393_v55 = vpop.xlane.xlu0 %2392 }
 0xb64   : > { %v2394_v56 = vsub.f32 %v2390_v34, %v2393_v55 }
 0xb66   : > { %v2395_v33 = vmul.f32 1.442695, %v2394_v56  ;;  %v3419_v56 = vld [vmem:[%s1299_s24] ss:$0 sm:$0xff] }
 0xb68   : > { %3826 = vpow2.f32 %v2395_v33 }
 0xb6b   : > { %v2509_v58 = vpop.xlane.xlu1 %2508 }
 0xb6c   : > { %v2510_v60 = vsub.f32 %v2506_v37, %v2509_v58 }
 0xb6e   : > { %v2511_v61 = vmul.f32 1.442695, %v2510_v60 }
 0xb70   : > { %3828 = vpow2.f32 %v2511_v61 }
 0xb72   : > { %v3827_v62 = vpop.eup %3826 }
 0xb73   : > { %v2625_v63 = vpop.xlane.xlu0 %2624  ;;  %v2397_v0 = vsel %vm1526_vm3, %v3827_v62, 0.0 }
 0xb74   : > { %v2626_v1 = vsub.f32 %v2622_v44, %v2625_v63  ;;  %2398 = vadd.xlane.f32.xlu0 %v2397_v0 }
 0xb76   : > { %v2627_v3 = vmul.f32 1.442695, %v2626_v1 }
 0xb78   : > { %3830 = vpow2.f32 %v2627_v3 }
 0xb7a   : > { %v3829_v4 = vpop.eup %3828 }
 0xb7b   : > { %v2513_v5 = vsel %vm1526_vm3, %v3829_v4, 0.0 }
 0xb7c   : > { %2514 = vadd.xlane.f32.xlu1 %v2513_v5 }
 0xb82   : > { %v3831_v6 = vpop.eup %3830 }
 0xb83   : > { %v2629_v7 = vsel %vm1526_vm3, %v3831_v6, 0.0 }
 0xb84   : > { %2630 = vadd.xlane.f32.xlu0 %v2629_v7  ;;  %v3800_v7 = vld [vmem:[%s4273_s17] sm:$0xff]  }
 0xb8d   : > { %2519 = vrot.lane.b32.xlu1 %v4475_v2, %s3976_s25 }
 0xb8e   : > { %v2285_v8 = vpop.xlane.xlu1 %2284 }
 0xb8f   : > { %3832 = vrcp.f32 %v2285_v8  ;;  %v3801_v8 = vld [vmem:[%s4273_s17 + $0x8] sm:$0xff]  }
 0xb91   : > { %2635 = vrot.lane.b32.xlu1 %v4475_v2, %s3977_s27 }
 0xb92   : > { %v2291_v9 = vpop.permute.xlu1 %2290 }
 0xb93   : > { %v2296_v10 = vsel %vm1592_vm8, %v2291_v9, 0  ;;  %v3803_v9 = vld [vmem:[%s4279_s6 + $0x8] sm:$0xff]  }
 0xb94   : > { %3603 = vmatpush3.bf16.msra.mxu0 %v2296_v10 }
 0xb95   : > { %3614 = vmatprep.subr.bf16.mxu0 %v3969_v18 }
 0xb99   : > { %v3833_v11 = vpop.eup %3832 }
 0xb9a   : > { %v2287_v12 = vmul.f32 %v3833_v11, %v3825_v53  ;;  %2403 = vrot.lane.b32.xlu0 %v4475_v2, %s3978_s5 }
 0xb9c   : > { %v2288_v13 = vpack.c.bf16 %v2287_v12, %v2287_v12 }
 0xb9e   : > { %3605 = vmatmul.mubr.msk.bf16.vlgmr.msra.gmra.mrb[28].mxu0 %vm1526_vm3, %v2288_v13 }
 0xb9f   : > { %3616 = vmatprep.mubr.msk.bf16.mxu0 %vm3970_vm1, %v3969_v18 }
 0xc01   : > { %v2399_v14 = vpop.xlane.xlu0 %2398 }
 0xc02   : > { %3834 = vrcp.f32 %v2399_v14  ;;  %v3423_v14 = vld [vmem:[%s1302_s10] ss:$0 sm:$0xff] }
 0xc09   : > { %v2515_v15 = vpop.xlane.xlu1 %2514 }
 0xc0a   : > { %3836 = vrcp.f32 %v2515_v15 }
 0xc0c   : > { %v3835_v16 = vpop.eup %3834 }
 0xc0d   : > { %v2401_v19 = vmul.f32 %v3835_v16, %v3827_v62  ;;  %v2520_v23 = vpop.permute.xlu1 %2519  ;;  %v3424_v16 = vld [vmem:[%s1305_s19] ss:$0 sm:$0xff] }
 0xc0e   : > { %v2525_v25 = vsel %vm1592_vm8, %v2520_v23, 0  ;;  %v3804_v23 = vld [vmem:[%s4279_s6 + $0x10] sm:$0xff]  }
 0xc0f   : > { %v2402_v2 = vpack.c.bf16 %v2401_v19, %v2401_v19 }
 0xc11   : > { %v2631_v17 = vpop.xlane.xlu0 %2630  ;;  %v2636_v27 = vpop.permute.xlu1 %2635 }
 0xc12   : > { %3838 = vrcp.f32 %v2631_v17  ;;  %v2641_v30 = vsel %vm1592_vm8, %v2636_v27, 0 }
 0xc14   : > { %v3837_v24 = vpop.eup %3836 }
 0xc15   : > { %v2404_v20 = vpop.permute.xlu0 %2403  ;;  %v2517_v26 = vmul.f32 %v3837_v24, %v3829_v4  ;;  %v3425_v24 = vld [vmem:[%s1313_s30] ss:$0 sm:$0xff] }
 0xc16   : > { %v2409_v22 = vsel %vm1592_vm8, %v2404_v20, 0 }
 0xc17   : > { %3615 = vmatpush3.bf16.msra.mxu0 %v2409_v22  ;;  %v2518_v28 = vpack.c.bf16 %v2517_v26, %v2517_v26 }
 0xc18   : > { %3626 = vmatprep.subr.bf16.mxu0 %v3969_v18 }
 0xc1a   : > { %3617 = vmatmul.mubr.msk.bf16.vlgmr.msra.gmra.mrb[32].mxu0 %vm1526_vm3, %v2402_v2  ;;  %v3805_v2 = vld [vmem:[%s4279_s6 + $0x18] sm:$0xff]  }
 0xc1b   : > { %3627 = vmatpush3.bf16.msra.mxu0 %v2525_v25  ;;  %3628 = vmatprep.mubr.msk.bf16.mxu0 %vm3970_vm1, %v3969_v18 }
 0xc1c   : > { %3638 = vmatprep.subr.bf16.mxu0 %v3969_v18  ;;  %v3839_v29 = vpop.eup %3838 }
 0xc1d   : > { %v2633_v31 = vmul.f32 %v3839_v29, %v3831_v6 }
 0xc1f   : > { %v2634_v32 = vpack.c.bf16 %v2633_v31, %v2633_v31 }
 0xc22   : > { %3629 = vmatmul.mubr.msk.bf16.vlgmr.msra.gmra.mrb[36].mxu0 %vm1526_vm3, %v2518_v28 }
 0xc23   : > { %3639 = vmatpush3.bf16.msra.mxu0 %v2641_v30  ;;  %3640 = vmatprep.mubr.msk.bf16.mxu0 %vm3970_vm1, %v3969_v18 }
 0xc24   : > { %3652 = vmatprep.subr.bf16.mxu0 %v3969_v18 }
 0xc2a   : > { %3641 = vmatmul.mubr.msk.bf16.vlgmr.msra.gmra.mrb[40].mxu0 %vm1526_vm3, %v2634_v32  ;;  %v3429_v32 = vld [vmem:[%s1321_s8] ss:$0 sm:$0xff]  ;;  %s4808_s8 = sld [smem:[#allocation41_spill]] }
 0xc2b   : > { %3656 = vmatprep.mubr.msk.bf16.mxu0 %vm3970_vm1, %v3969_v18  ;;  %3653 = vmatpush3.bf16.msra.mxu0 %v3800_v7 }
 0xc2c   : > { %3654 = vmatprep.subr.bf16.mxu0 %v3969_v18 }
 0xc2f   : > { %3655 = vmatpush3.bf16.msra.mxu0 %v3801_v8 }
 0xc30   : > { %p3437_p1 = scmp.ne.s32.totalorder %s4808_s8, 1 }
 0xc71   : > { %v2332_v34 = vpop.f32.mrb[28].mxu0 }
 0xc72   : > { %2338 = vst.msk [vmem:[#allocation4] sm:$0xff] %vm1526_vm3, %v2332_v34  ;;  %v3606_v35 = vpop.f32.mrb[29].mxu0 }
 0xc73   : > { %v2335_v36 = vpop.f32.mrb[30].mxu0 }
 0xc74   : > { %v3607_v39 = vpop.f32.mrb[31].mxu0 }
 0xced   : > { %v2445_v51 = vpop.f32.mrb[32].mxu0 }
 0xcee   : > { %2452 = vrot.lane.b32.xlu0 %v2445_v51, %s3979_s21  ;;  %v3618_v52 = vpop.f32.mrb[33].mxu0 }
 0xcef   : > { %v2448_v37 = vpop.f32.mrb[34].mxu0 }
 0xcf0   : > { %v3619_v38 = vpop.f32.mrb[35].mxu0 }
 0xcf5   : > { %v2561_v42 = vpop.f32.mrb[36].mxu0 }
 0xcf6   : > { %2568 = vrot.lane.b32.xlu1 %v2561_v42, %s3980_s29  ;;  %v3630_v43 = vpop.f32.mrb[37].mxu0 }
 0xcf7   : > { %v2564_v44 = vpop.f32.mrb[38].mxu0 }
 0xcf8   : > { %v3631_v45 = vpop.f32.mrb[39].mxu0 }
 0xcfd   : > { %v2677_v46 = vpop.f32.mrb[40].mxu0 }
 0xcfe   : > { %2684 = vrot.lane.b32.xlu0 %v2677_v46, %s3981_s3  ;;  %v3642_v21 = vpop.f32.mrb[41].mxu0 }
 0xcff   : > { %v2680_v47 = vpop.f32.mrb[42].mxu0  ;;  %v3435_v21 = vld [vmem:[%s1324_s12] ss:$0 sm:$0xff] }
 0xd00   : > { %v3643_v48 = vpop.f32.mrb[43].mxu0 }
 0xd01   : > { %v3436_v48 = vld [vmem:[%s1327_s20] ss:$0 sm:$0xff] }
 0xd60   : > { %v2453_v49 = vpop.permute.xlu0 %2452 }
 0xd61   : > { %2455 = vst.msk [vmem:[#allocation4] sm:$0xff] %vm1753_vm9, %v2453_v49 }
 0xd68   : > { %v2569_v50 = vpop.permute.xlu1 %2568 }
 0xd69   : > { %2571 = vst.msk [vmem:[#allocation4] sm:$0xff] %vm1870_vm10, %v2569_v50 }
 0xd70   : > { %v2685_v53 = vpop.permute.xlu0 %2684 }
 0xd71   : > { %2687 = vst.msk [vmem:[#allocation4] sm:$0xff] %vm1987_vm11, %v2685_v53 }
 0xd78   : > { %v2688_v54 = vld [vmem:[#allocation4] sm:$0xff] }
 0xd79   : > { %v2689_v55 = vpack.c.bf16 %v2688_v54, %v2688_v54 }
 0xd7b   : > { %3649 = vmatmul.mubr.msk.bf16.vlgmr.msra.gmra.mrb[40].mxu1 %vm1417_vm2, %v2689_v55 }
 0xd7c   : > { %3668 = vmatprep.mubr.msk.bf16.mxu1 %vm3970_vm1, %v3969_v18 }
 0xe4e   : > { %v2750_v33 = vpop.f32.mrb[40].mxu1 }
 0xe4f   : > { %v2751_v58 = vadd.f32 %v3419_v56, %v2750_v33  ;;  %v3650_v60 = vpop.f32.mrb[41].mxu1 }
 0xe50   : > { %v2753_v61 = vpop.f32.mrb[42].mxu1 }
 0xe51   : > { %v3651_v62 = vpop.f32.mrb[43].mxu1  ;;  %v2756_v63 = vadd.f32 %v2751_v58, %v4465_v59  ;;  %v3802_v59 = vld [vmem:[%s4279_s6] sm:$0xff]   ;;  %s4809_s6 = sld [smem:[#allocation51_spill]] (!%p3437_p1) }
 0xe52   : > { %3661 = vmatpush3.bf16.msra.mxu1 %v3802_v59 }
 0xe53   : > { %v2759_v0 = vsel %vm1417_vm2, %v2756_v63, 0.0  ;;  %3662 = vmatprep.subr.bf16.mxu1 %v3969_v18 }
 0xe54   : > { %2760 = vadd.xlane.f32.xlu1 %v2759_v0 }
 0xe56   : > { %3663 = vmatpush3.bf16.msra.mxu1 %v3803_v9 }
 0xe57   : > { %3664 = vmatprep.subr.bf16.mxu1 %v3969_v18  ;;  %s4810_s10 = scalar_lea.vmem (!%p3437_p1), [#allocation5], %s4809_s6 }
 0xe5a   : > { %3665 = vmatpush3.bf16.msra.mxu1 %v3804_v23 }
 0xe5b   : > { %3666 = vmatprep.subr.bf16.mxu1 %v3969_v18 }
 0xe5e   : > { %3667 = vmatpush3.bf16.msra.mxu1 %v3805_v2 }
 0xee1   : > { %v2761_v1 = vpop.xlane.xlu1 %2760 }
 0xee2   : > { %v2762_v3 = vmul.f32 0.03125, %v2761_v1 }
 0xee4   : > { %v2763_v4 = vsub.f32 %v2756_v63, %v2762_v3 }
 0xee6   : > { %v2764_v5 = vmul.f32 %v2763_v4, %v2763_v4 }
 0xee8   : > { %v2765_v6 = vsel %vm1417_vm2, %v2764_v5, 0.0 }
 0xee9   : > { %2766 = vadd.xlane.f32.xlu0 %v2765_v6 }
 0xf76   : > { %v2767_v10 = vpop.xlane.xlu0 %2766 }
 0xf77   : > { %v2768_v11 = vmul.f32 0.03125, %v2767_v10 }
 0xf79   : > { %v2769_v12 = vadd.f32 1e-06, %v2768_v11 }
 0xf7b   : > { %3840 = vrsqrt.f32 %v2769_v12 }
 0xf85   : > { %v3841_v13 = vpop.eup %3840 }
 0xf86   : > { %v2771_v15 = vmul.f32 %v3841_v13, %v2763_v4 }
 0xf88   : > { %v2778_v17 = vmul.f32 %v3423_v14, %v2771_v15 }
 0xf8a   : > { %v2785_v19 = vadd.f32 %v3424_v16, %v2778_v17 }
 0xf8c   : > { %v2786_v20 = vmul.f32 %v2785_v19, %v4462_v57 }
 0xf8e   : > { %v2787_v22 = vpack.c.bf16 %v2786_v20, %v2786_v20 }
 0xf90   : > { %3657 = vmatmul.mubr.msk.bf16.vlgmr.msra.gmra.mrb[44].mxu0 %vm1417_vm2, %v2787_v22 }
0x1063   : > { %v2848_v25 = vpop.f32.mrb[44].mxu0 }
0x1064   : > { %v2849_v26 = vadd.f32 %v3425_v24, %v2848_v25  ;;  %v3658_v27 = vpop.f32.mrb[45].mxu0 }
0x1065   : > { %v2851_v28 = vpop.f32.mrb[46].mxu0 }
0x1066   : > { %v2854_v29 = vmax.f32 %v2849_v26, 0.0  ;;  %v3659_v30 = vpop.f32.mrb[47].mxu0 }
0x1068   : > { %v2855_v31 = vpack.c.bf16 %v2854_v29, %v2854_v29 }
0x106a   : > { %3669 = vmatmul.mubr.msk.bf16.vlgmr.msra.gmra.mrb[44].mxu1 %vm2895_vm14, %v2855_v31 }
0x113d   : > { %v2933_v34 = vpop.f32.mrb[44].mxu1 }
0x113e   : > { %v2934_v35 = vadd.f32 %v3429_v32, %v2933_v34  ;;  %v3670_v36 = vpop.f32.mrb[45].mxu1 }
0x113f   : > { %v2936_v39 = vpop.f32.mrb[46].mxu1 }
0x1140   : > { %v3671_v18 = vpop.f32.mrb[47].mxu1  ;;  %v2939_v51 = vadd.f32 %v2934_v35, %v2786_v20 }
0x1142   : > { %v2942_v52 = vsel %vm1417_vm2, %v2939_v51, 0.0 }
0x1143   : > { %2943 = vadd.xlane.f32.xlu0 %v2942_v52 }
0x11d0   : > { %v2944_v37 = vpop.xlane.xlu0 %2943 }
0x11d1   : > { %v2945_v38 = vmul.f32 0.03125, %v2944_v37 }
0x11d3   : > { %v2946_v40 = vsub.f32 %v2939_v51, %v2945_v38 }
0x11d5   : > { %v2947_v41 = vmul.f32 %v2946_v40, %v2946_v40 }
0x11d7   : > { %v2948_v42 = vsel %vm1417_vm2, %v2947_v41, 0.0 }
0x11d8   : > { %2949 = vadd.xlane.f32.xlu1 %v2948_v42 }
0x1265   : > { %v2950_v43 = vpop.xlane.xlu1 %2949 }
0x1266   : > { %v2951_v44 = vmul.f32 0.03125, %v2950_v43 }
0x1268   : > { %v2952_v45 = vadd.f32 1e-06, %v2951_v44 }
0x126a   : > { %3842 = vrsqrt.f32 %v2952_v45 }
0x1274   : > { %v3843_v46 = vpop.eup %3842 }
0x1275   : > { %v2954_v47 = vmul.f32 %v3843_v46, %v2946_v40 }
0x1277   : > { %v2961_v49 = vmul.f32 %v3435_v21, %v2954_v47  ;;  %2974 = sbr.rel (%p3437_p1) target bundleno = 4734 (0x127e), region = 144 }
0x1279   : > { %v2968_v50 = vadd.f32 %v3436_v48, %v2961_v49 }
0x127b   : > { %v2969_v53 = vmul.f32 %v2968_v50, %v4462_v57 }
0x127d   : > { %2970 = vst.msk [vmem:[#allocation2] sm:$0xff] %vm1417_vm2, %v2969_v53  ;;  %2975 = vst.msk [vmem:[%s4810_s10] sm:$0xff] (!%p3437_p1), %vm1417_vm2, %v2969_v53 }
0x127e PF: > { %s4811_s0 = sld [smem:[#allocation42_spill]]  ;;  %s4812_s22 = sld [smem:[#allocation37_spill]] }
0x127f   : > { %s4814_s12 = sld [smem:[#allocation51_spill]]  ;;  %s4815_s11 = sld [smem:[#allocation39_spill]] }
0x1280   : > { %s3982_s4 = smov [#allocation5]  }
0x1281   : > { %s3848_s15 = sshll.u32 %s3982_s4, 4  ;;  %s3849_s15 = int_to_ptr.vmem [resolvable:$false] %s3848_s15 }
0x1282   : > { %s3850_s14 = scalar_lea.vmem %s3849_s15, 256 }
0x1284   : > { %s4813_s25 = smov %s4812_s22  ;;  %s3439_s20 = sshll.u32 %s4811_s0, 7 }
0x1285   : > { %s4616_s16 = scalar_lea.hbm %s4812_s22, %s3439_s20  ;;  %s4817_s27 = scalar_lea.vmem [#allocation5], %s4814_s12 }
0x1286   : > { %s2990_s5 = sshll.u32 %s4817_s27, 4  ;;  %s4818_s21 = sand.u32 1, %s4815_s11   ;;  %s2991_s5 = int_to_ptr.vmem [resolvable:$true] %s2990_s5 }
0x1287   : > { %s2977_s29 = scalar_lea.sflag [#allocation6], %s4818_s21  ;;  %s3844_s3 = scalar_lea.vmem %s2991_s5, 128 }
0x1288   : > { %p3845_p2 = scmp.ne.s32.totalorder %s2991_s5, %s3844_s3  ;;  %p3851_p6 = scmp.lt.s32.totalorder %s2991_s5, %s3849_s15 }
0x1289   : > { %p3852_p7 = scmp.lt.s32.totalorder %s3850_s14, %s3844_s3 }
0x128a   : > { %p3846_p4 = pnand %p3845_p2, %p4187_p3 }
0x128b   : > { %p3853_p8 = por %p3852_p7, %p3851_p6 }
0x128c   : > { %p3847_p5 = pneg %p3846_p4 }
0x128e   : > { %p3854_p10 = pnand %p3853_p8, %p3847_p5 }
0x1290   : > { %3857 = shalt.err (!%p3854_p10)
}
0x1291   : > { %s3858_s7 = scalar_lea.hbm %s4616_s16, 128  ;;  %s3862_s2 = scalar_lea.hbm %s4813_s25, 256 }
0x1292   : > { %p3859_p11 = scmp.ne.s32.totalorder %s4616_s16, %s3858_s7  ;;  %p3863_p0 = scmp.lt.u32.totalorder %s4616_s16, %s4813_s25 }
0x1293   : > { %p3864_p1 = scmp.lt.u32.totalorder %s3862_s2, %s3858_s7  ;;  %p3866_p4 = scmp.lt.u32.totalorder %s3858_s7, %s4616_s16 }
0x1294   : > { %p3860_p12 = pnand %p3859_p11, %p4187_p3 }
0x1295   : > { %p3865_p2 = por %p3864_p1, %p3863_p0 }
0x1296   : > { %p3861_p13 = pneg %p3860_p12 }
0x1297   : > { %p3867_p6 = por %p3866_p4, %p3865_p2 }
0x1299   : > { %p3868_p5 = pnand %p3867_p6, %p3861_p13 }
0x129b   : > { %3871 = shalt.err (!%p3868_p5)
}
0x129c   : > { %3672 = dma.vmem_to_hbm [thread:$0]  (%p4187_p3), %s2991_s5, 128, %s4616_s16, %s2977_s29  }
0x129d PF: > { %s4819_s9 = sld [smem:[#allocation45_spill]]  ;;  %s4820_s13 = sld [smem:[#allocation38_spill]] }
0x12a3   : > { %p3678_p7 = scmp.ge.s32.totalorder %s4819_s9, 2  ;;  %s3002_s26 = sand.u32 1, %s4820_s13  }
0x12a4   : > { %s3003_s24 = scalar_lea.sflag [#allocation6], %s3002_s26 }
0x12a5   : > { %p3675_p8 = pnand %p3678_p7, %p4197_p9 }
0x12a7   : > { %3905 = dma.done.wait (!%p3675_p8), %s3003_s24, 128  }
0x12a8   : > { %3907 = vsyncadd (!%p3675_p8), %s3003_s24, 4294967168  ;;  %s72_s23 = sadd.s32 1, %s4819_s9   ;;  %s4822_s7 = sld [smem:[#allocation39_spill]] }
0x12a9   : > { %p69_p10 = scmp.ge.s32.totalorder %s72_s23, 6   ;;  %s4823_s10 = sld [smem:[#allocation40_spill]] }
0x12aa   : > { %s4824_s11 = sld [smem:[#allocation50_spill]]  ;;  %s4825_s15 = sld [smem:[#allocation43_spill]] }
0x12ab   : > { %s4826_s16 = sld [smem:[#allocation44_spill]]  ;;  %s4827_s18 = sld [smem:[#allocation46_spill]] }
0x12ac   : > { %s4828_s22 = sld [smem:[#allocation48_spill]]  ;;  %71 = sbr.rel (!%p69_p10) target bundleno = 72 (0x48), region = 286 }
0x12b3   :  { %3008 = vsyncpa [#allocation6], 1 }
0x12b4   :  { %3010 = vsyncpa [#allocation6 + $0x1], 1 }

</bundles_post_ra>
